<compile_context>
chip_gen: v7x
topology: tpu7x:2x2x1
jax: 0.10.0
libtpu: 0.0.40
codegen_flags: <defaults>
</compile_context>

<pallas_src>
import functools

import jax
import jax.numpy as jnp
from jax.experimental import pallas as pl
from jax.experimental.pallas import tpu as pltpu
from jax.scipy.linalg import block_diag


def _round_up(a, b):
    return (a + b - 1) // b * b


def _bf16_split3(m):
    """Split an f32 matrix into 3 bf16-exact parts summing (in f32) to the
    original values bit-exactly."""
    hi = m.astype(jnp.bfloat16).astype(jnp.float32)
    r1 = m - hi
    mid = r1.astype(jnp.bfloat16).astype(jnp.float32)
    lo = r1 - mid
    return hi, mid, lo


def _vq_kernel(x_ref, cbexp_ref, c2_ref, g_ref, q_ref, part_ref, *,
               num_groups, group_width, rows_per_tile, valid_elems):
    """One row-tile of the vector quantizer.

    x_ref   : (TM4, P*D)     P consecutive D-vectors packed per lane-dense row
    cbexp   : (P*D, P*Kp)    block-diagonal (-2 * codebook)^T (group p <-> sub-vec p)
    c2      : (1,  P*Kp)     per-code |c|^2 (+1e30 on padded codes), tiled P times
    g_ref   : (3, P*Kp, P*D) bf16 one-hot gather tables (3 bf16-exact splits, fused
                             over the P groups along the contraction axis)
    q_ref   : (TM4, P*D)     quantized output (lane-dense)
    part_ref: (1, 1, 1)      partial sum of squared error for this tile
    """
    x = x_ref[...]                                                       # (TM4, PD) f32

    # d = |c|^2 - 2 x.c^T  (the -2 is folded into the resident cbexp table;
    # the per-row |x|^2 term of the reference distance is dropped: constant per row)
    xc = jnp.dot(x, cbexp_ref[...], preferred_element_type=jnp.float32)  # (TM4, P*Kp)
    d = c2_ref[...] + xc

    # Per-group argmin -> fused one-hot.  lane iota hoisted out of the group loop.
    lane = jax.lax.broadcasted_iota(jnp.int32, (x.shape[0], group_width), 1)
    oh_parts = []
    for p in range(num_groups):
        dp = d[:, p * group_width:(p + 1) * group_width]                 # (TM4, Kp)
        dmin = jnp.min(dp, axis=1, keepdims=True)
        # first-occurrence tie break, exactly like torch.argmin
        idx = jnp.min(jnp.where(dp == dmin, lane, group_width),
                      axis=1, keepdims=True)
        oh_parts.append((lane == idx).astype(jnp.bfloat16))              # (TM4, Kp)
    oh = oh_parts[0] if num_groups == 1 else jnp.concatenate(oh_parts, axis=1)

    # One-hot MXU gather: 3 fused single-pass bf16 matmuls (0/1 and the bf16-exact
    # splits are exact in bf16; f32 accumulation) -> bit-exact codebook rows.
    q = jnp.dot(oh, g_ref[0], preferred_element_type=jnp.float32)        # (TM4, PD)
    q = q + jnp.dot(oh, g_ref[1], preferred_element_type=jnp.float32)
    q = q + jnp.dot(oh, g_ref[2], preferred_element_type=jnp.float32)
    q_ref[...] = q.astype(q_ref.dtype)

    # Partial VQ loss (sum of squared error).  Only tiles that can contain padding
    # rows build the element mask; interior tiles do an unmasked diff.
    i = pl.program_id(0)
    tile_elems = rows_per_tile * x.shape[1]
    start_elem = i * tile_elems

    def _accumulate(diff):
        ssum = jnp.sum(jnp.sum(diff * diff, axis=1, keepdims=True),
                       axis=0, keepdims=True)                            # (1, 1)
        part_ref[...] = ssum[None]                                       # (1, 1, 1)

    @pl.when(start_elem + tile_elems <= valid_elems)
    def _():
        _accumulate(q - x)

    @pl.when(start_elem + tile_elems > valid_elems)
    def _():
        rr = jax.lax.broadcasted_iota(jnp.int32, x.shape, 0)
        ll = jax.lax.broadcasted_iota(jnp.int32, x.shape, 1)
        elem = start_elem + rr * x.shape[1] + ll
        mask = (elem < valid_elems).astype(jnp.float32)
        _accumulate((q - x) * mask)


def vector_quantize(inputs, codebook, commitment_cost, *, tile_rows=2048):
    """Forward pass of the PyTorch VectorQuantizer.  Returns (quantized, loss)."""
    in_shape = inputs.shape
    in_dtype = inputs.dtype
    Ke, D = codebook.shape

    flat = inputs.astype(jnp.float32).reshape(-1, D)
    M = flat.shape[0]

    # Lane packing: view P consecutive D-vectors as one 128-wide row when possible.
    # TODO(synk): when D does not divide 128 we fall back to P=1 (masked partial
    # stores); correct but slower.
    P = 128 // D if (D < 128 and 128 % D == 0) else 1
    PD = P * D
    Kp = _round_up(Ke, 128)            # lane-dense / full-width codebook axis

    # Row-tile selection (units of original D-vectors): keep the packed sublane dim
    # a multiple of 8 and keep the tile count even (>=2 when M allows) so the
    # "parallel" grid splits evenly across v7x's two TensorCores.
    unit = 8 * P
    tm_req = max(unit, (tile_rows // unit) * unit)
    num_tiles = max(1, -(-M // tm_req))
    if M > unit:
        num_tiles = max(num_tiles, 2)
    if num_tiles > 1 and num_tiles % 2:
        num_tiles += 1
    tm = _round_up(-(-M // num_tiles), unit)
    M_pad = tm * num_tiles
    if M_pad != M:
        flat = jnp.concatenate(
            [flat, jnp.zeros((M_pad - M, D), jnp.float32)], axis=0)
    x_packed = flat.reshape(M_pad // P, PD)
    tm4 = tm // P

    # ---- small resident tables (built once in the wrapper) --------------------
    cb = codebook.astype(jnp.float32)
    cb_pad = jnp.zeros((Kp, D), jnp.float32).at[:Ke].set(cb)

    # block-diagonal (-2 * codebook)^T: group p contracts against packed sub-vector p
    cbexp = block_diag(*([(-2.0 * cb_pad).T] * P))               # (PD, P*Kp)

    # per-code |c|^2; padded codes get a huge sentinel so they never win the argmin
    c2 = jnp.sum(cb_pad * cb_pad, axis=1)
    c2 = jnp.where(jnp.arange(Kp) < Ke, c2, 1e30)
    c2row = jnp.tile(c2, (P,)).reshape(1, P * Kp)                # (1, P*Kp)

    # gather tables: 3 bf16-exact splits, groups fused along the contraction axis.
    # G_t[p*Kp + k, p*D:(p+1)*D] = split_t(codebook[k]); zero elsewhere.
    hi, mid, lo = _bf16_split3(cb_pad)
    g_splits = []
    for part in (hi, mid, lo):
        bands = [jnp.pad(part, ((0, 0), (p * D, (P - 1 - p) * D)))  # (Kp, PD)
                 for p in range(P)]
        g_splits.append(jnp.concatenate(bands, axis=0).astype(jnp.bfloat16))
    g_tab = jnp.stack(g_splits, axis=0)                           # (3, P*Kp, PD) bf16

    # Output store dtype: write bf16 directly when the input is bf16 (halves HBM
    # writeback); otherwise keep f32.
    q_dtype = (jnp.bfloat16 if jnp.dtype(in_dtype) == jnp.dtype(jnp.bfloat16)
               else jnp.float32)
    q_itemsize = jnp.dtype(q_dtype).itemsize

    kernel = functools.partial(
        _vq_kernel, num_groups=P, group_width=Kp,
        rows_per_tile=tm4, valid_elems=M * D)

    # VMEM footprint (Pallas double-buffers every spec by default) -> scoped limit.
    vmem_needed = (2 * 4 * tm4 * PD                       # x tiles
                   + 2 * q_itemsize * tm4 * PD            # q tiles
                   + 2 * (cbexp.size * 4 + c2row.size * 4 + g_tab.size * 2)
                   + 2 * 4 * 8 * 128)                     # partial-sum tiles (padded)
    vmem_limit = int(min(max(32 * 1024 * 1024, vmem_needed + (4 << 20)),
                         64 * 1024 * 1024))

    flops = num_tiles * (2 * tm4 * PD * (P * Kp)          # distance matmul
                         + 3 * 2 * tm4 * (P * Kp) * PD)   # fused gather matmuls
    bytes_accessed = (4 * x_packed.size + q_itemsize * x_packed.size
                      + 4 * (cbexp.size + c2row.size) + 2 * g_tab.size
                      + 4 * num_tiles)

    q_packed, partials = pl.pallas_call(
        kernel,
        out_shape=(
            jax.ShapeDtypeStruct((M_pad // P, PD), q_dtype),
            jax.ShapeDtypeStruct((num_tiles, 1, 1), jnp.float32),
        ),
        grid=(num_tiles,),
        in_specs=[
            pl.BlockSpec((tm4, PD), lambda i: (i, 0)),            # x tile (pipelined)
            pl.BlockSpec((PD, P * Kp), lambda i: (0, 0)),         # resident
            pl.BlockSpec((1, P * Kp), lambda i: (0, 0)),          # resident
            pl.BlockSpec((3, P * Kp, PD), lambda i: (0, 0, 0)),   # resident
        ],
        out_specs=(
            pl.BlockSpec((tm4, PD), lambda i: (i, 0)),
            pl.BlockSpec((1, 1, 1), lambda i: (i, 0, 0)),
        ),
        compiler_params=pltpu.CompilerParams(
            dimension_semantics=("parallel",),
            vmem_limit_bytes=vmem_limit),
        cost_estimate=pl.CostEstimate(
            flops=int(flops), transcendentals=0,
            bytes_accessed=int(bytes_accessed)),
    )(x_packed, cbexp, c2row, g_tab)

    quantized = (q_packed.astype(jnp.float32).reshape(M_pad, D)[:M]
                 .reshape(in_shape).astype(in_dtype))
    # q_latent_loss + commitment_cost * e_latent_loss == (1 + cc) * mean((q - x)^2)
    loss = (1.0 + commitment_cost) * jnp.sum(partials) / (M * D)
    # TODO(synk): the straight-through estimator (inputs + (q - inputs).detach())
    # only changes gradients; the forward value equals `quantized`.  Training would
    # need a jax.custom_vjp wrapper (the (1+cc)*mean collapse is forward-only too).
    return quantized, loss


if __name__ == "__main__":
    key = jax.random.PRNGKey(0)

    # Small VQ-VAE-like latent: channels == embedding_dim (the PyTorch module
    # flattens the NCHW tensor row-major into (-1, embedding_dim); we replicate it).
    N, C, H, W = 2, 32, 16, 16
    embedding_dim = 32
    num_embeddings = 64
    commitment_cost = 0.25

    k_cb, k_x = jax.random.split(key)
    codebook = jax.random.uniform(
        k_cb, (num_embeddings, embedding_dim), jnp.float32,
        -1.0 / num_embeddings, 1.0 / num_embeddings)   # matches nn.Embedding init
    x = jax.random.normal(k_x, (N, C, H, W), jnp.float32)

    vq = jax.jit(functools.partial(vector_quantize, commitment_cost=commitment_cost))
    quantized, loss = vq(x, codebook)
    jax.block_until_ready((quantized, loss))

    assert quantized.shape == x.shape, quantized.shape
    assert loss.shape == (), loss.shape

    # ---- correctness checks against an exact (non-matmul) reference -----------
    flat = x.reshape(-1, embedding_dim)
    qf = quantized.reshape(-1, embedding_dim)
    # every quantized vector must be (bit-)exactly a codebook row
    snap = jnp.min(jnp.max(jnp.abs(qf[:, None, :] - codebook[None, :, :]), axis=-1),
                   axis=-1)
    assert float(jnp.max(snap)) <= 1e-6, float(jnp.max(snap))
    # it must be the nearest codebook row (up to matmul rounding on near-ties)
    exact_d = jnp.sum((flat[:, None, :] - codebook[None, :, :]) ** 2, axis=-1)
    best = jnp.min(exact_d, axis=-1)
    chosen = jnp.sum((qf - flat) ** 2, axis=-1)
    assert float(jnp.max(chosen - best)) <= 1e-2, float(jnp.max(chosen - best))
    # loss matches q_latent + commitment_cost * e_latent == (1 + cc) * mean((q-x)^2)
    loss_ref = (1.0 + commitment_cost) * jnp.sum(best) / flat.size
    assert jnp.allclose(loss, loss_ref, rtol=1e-3, atol=1e-6), (
        float(loss), float(loss_ref))

    print("KERNEL_OK")
</pallas_src>

<mosaic_0001>
module attributes {stable_mosaic.version = 11 : i64} {
  func.func @_vq_kernel(%arg0: i32, %arg1: memref<64x128xf32, #tpu.memory_space<vmem>>, %arg2: memref<128x512xf32, #tpu.memory_space<vmem>>, %arg3: memref<1x512xf32, #tpu.memory_space<vmem>>, %arg4: memref<3x512x128xbf16, #tpu.memory_space<vmem>>, %arg5: memref<64x128xf32, #tpu.memory_space<vmem>>, %arg6: memref<1x1x1xf32, #tpu.memory_space<vmem>>) attributes {dimension_semantics = [#tpu.dimension_semantics<parallel>], iteration_bounds = array<i64: 2>, scalar_prefetch = 0 : i64, scratch_operands = 0 : i64, tpu.core_type = #tpu.core_type<tc>, window_params = [{transform_indices = @transform_0, window_bounds = array<i64: 64, 128>}, {pipeline_mode = #tpu.pipeline_mode<synchronous>, transform_indices = @transform_1, window_bounds = array<i64: 128, 512>}, {pipeline_mode = #tpu.pipeline_mode<synchronous>, transform_indices = @transform_2, window_bounds = array<i64: 1, 512>}, {pipeline_mode = #tpu.pipeline_mode<synchronous>, transform_indices = @transform_3, window_bounds = array<i64: 3, 512, 128>}, {transform_indices = @transform_4, window_bounds = array<i64: 64, 128>}, {transform_indices = @transform_5, window_bounds = array<i64: 1, 1, 1>}]} {
    %c0 = arith.constant 0 : index
    %c0_0 = arith.constant 0 : index
    %0 = vector.load %arg1[%c0, %c0_0] : memref<64x128xf32, #tpu.memory_space<vmem>>, vector<64x128xf32>
    %c0_1 = arith.constant 0 : index
    %c0_2 = arith.constant 0 : index
    %1 = vector.load %arg2[%c0_1, %c0_2] : memref<128x512xf32, #tpu.memory_space<vmem>>, vector<128x512xf32>
    %cst = arith.constant dense<0.000000e+00> : vector<64x512xf32>
    %2 = tpu.matmul %0, %1, %cst {dimension_numbers = #tpu.dot_dimension_numbers<[1], [0], [0], [1], [0, 0, 1, 1], [], []>} : vector<64x128xf32>, vector<128x512xf32>, vector<64x512xf32> -> vector<64x512xf32>
    %c0_3 = arith.constant 0 : index
    %c0_4 = arith.constant 0 : index
    %3 = vector.load %arg3[%c0_3, %c0_4] : memref<1x512xf32, #tpu.memory_space<vmem>>, vector<1x512xf32>
    %4 = vector.broadcast %3 : vector<1x512xf32> to vector<64x512xf32>
    %5 = arith.addf %4, %2 : vector<64x512xf32>
    %6 = tpu.iota {dimensions = array<i32: 1>} : vector<64x128xi32>
    %7 = vector.extract_strided_slice %5 {offsets = [0, 0], sizes = [64, 128], strides = [1, 1]} : vector<64x512xf32> to vector<64x128xf32>
    %cst_5 = arith.constant dense<0x7F800000> : vector<64xf32>
    %8 = vector.multi_reduction <minimumf>, %7, %cst_5 [1] : vector<64x128xf32> to vector<64xf32>
    %9 = vector.shape_cast %8 : vector<64xf32> to vector<64x1xf32>
    %10 = vector.broadcast %9 : vector<64x1xf32> to vector<64x128xf32>
    %11 = arith.cmpf oeq, %7, %10 : vector<64x128xf32>
    %c128_i32 = arith.constant 128 : i32
    %12 = vector.broadcast %c128_i32 : i32 to vector<64x128xi32>
    %13 = arith.select %11, %6, %12 : vector<64x128xi1>, vector<64x128xi32>
    %cst_6 = arith.constant dense<2147483647> : vector<64xi32>
    %14 = vector.multi_reduction <minsi>, %13, %cst_6 [1] : vector<64x128xi32> to vector<64xi32>
    %15 = vector.shape_cast %14 : vector<64xi32> to vector<64x1xi32>
    %16 = vector.broadcast %15 : vector<64x1xi32> to vector<64x128xi32>
    %17 = arith.cmpi eq, %6, %16 : vector<64x128xi32>
    %18 = arith.extui %17 : vector<64x128xi1> to vector<64x128xi32>
    %19 = arith.sitofp %18 : vector<64x128xi32> to vector<64x128xf32>
    %20 = arith.truncf %19 : vector<64x128xf32> to vector<64x128xbf16>
    %21 = vector.extract_strided_slice %5 {offsets = [0, 128], sizes = [64, 128], strides = [1, 1]} : vector<64x512xf32> to vector<64x128xf32>
    %cst_7 = arith.constant dense<0x7F800000> : vector<64xf32>
    %22 = vector.multi_reduction <minimumf>, %21, %cst_7 [1] : vector<64x128xf32> to vector<64xf32>
    %23 = vector.shape_cast %22 : vector<64xf32> to vector<64x1xf32>
    %24 = vector.broadcast %23 : vector<64x1xf32> to vector<64x128xf32>
    %25 = arith.cmpf oeq, %21, %24 : vector<64x128xf32>
    %c128_i32_8 = arith.constant 128 : i32
    %26 = vector.broadcast %c128_i32_8 : i32 to vector<64x128xi32>
    %27 = arith.select %25, %6, %26 : vector<64x128xi1>, vector<64x128xi32>
    %cst_9 = arith.constant dense<2147483647> : vector<64xi32>
    %28 = vector.multi_reduction <minsi>, %27, %cst_9 [1] : vector<64x128xi32> to vector<64xi32>
    %29 = vector.shape_cast %28 : vector<64xi32> to vector<64x1xi32>
    %30 = vector.broadcast %29 : vector<64x1xi32> to vector<64x128xi32>
    %31 = arith.cmpi eq, %6, %30 : vector<64x128xi32>
    %32 = arith.extui %31 : vector<64x128xi1> to vector<64x128xi32>
    %33 = arith.sitofp %32 : vector<64x128xi32> to vector<64x128xf32>
    %34 = arith.truncf %33 : vector<64x128xf32> to vector<64x128xbf16>
    %35 = vector.extract_strided_slice %5 {offsets = [0, 256], sizes = [64, 128], strides = [1, 1]} : vector<64x512xf32> to vector<64x128xf32>
    %cst_10 = arith.constant dense<0x7F800000> : vector<64xf32>
    %36 = vector.multi_reduction <minimumf>, %35, %cst_10 [1] : vector<64x128xf32> to vector<64xf32>
    %37 = vector.shape_cast %36 : vector<64xf32> to vector<64x1xf32>
    %38 = vector.broadcast %37 : vector<64x1xf32> to vector<64x128xf32>
    %39 = arith.cmpf oeq, %35, %38 : vector<64x128xf32>
    %c128_i32_11 = arith.constant 128 : i32
    %40 = vector.broadcast %c128_i32_11 : i32 to vector<64x128xi32>
    %41 = arith.select %39, %6, %40 : vector<64x128xi1>, vector<64x128xi32>
    %cst_12 = arith.constant dense<2147483647> : vector<64xi32>
    %42 = vector.multi_reduction <minsi>, %41, %cst_12 [1] : vector<64x128xi32> to vector<64xi32>
    %43 = vector.shape_cast %42 : vector<64xi32> to vector<64x1xi32>
    %44 = vector.broadcast %43 : vector<64x1xi32> to vector<64x128xi32>
    %45 = arith.cmpi eq, %6, %44 : vector<64x128xi32>
    %46 = arith.extui %45 : vector<64x128xi1> to vector<64x128xi32>
    %47 = arith.sitofp %46 : vector<64x128xi32> to vector<64x128xf32>
    %48 = arith.truncf %47 : vector<64x128xf32> to vector<64x128xbf16>
    %49 = vector.extract_strided_slice %5 {offsets = [0, 384], sizes = [64, 128], strides = [1, 1]} : vector<64x512xf32> to vector<64x128xf32>
    %cst_13 = arith.constant dense<0x7F800000> : vector<64xf32>
    %50 = vector.multi_reduction <minimumf>, %49, %cst_13 [1] : vector<64x128xf32> to vector<64xf32>
    %51 = vector.shape_cast %50 : vector<64xf32> to vector<64x1xf32>
    %52 = vector.broadcast %51 : vector<64x1xf32> to vector<64x128xf32>
    %53 = arith.cmpf oeq, %49, %52 : vector<64x128xf32>
    %c128_i32_14 = arith.constant 128 : i32
    %54 = vector.broadcast %c128_i32_14 : i32 to vector<64x128xi32>
    %55 = arith.select %53, %6, %54 : vector<64x128xi1>, vector<64x128xi32>
    %cst_15 = arith.constant dense<2147483647> : vector<64xi32>
    %56 = vector.multi_reduction <minsi>, %55, %cst_15 [1] : vector<64x128xi32> to vector<64xi32>
    %57 = vector.shape_cast %56 : vector<64xi32> to vector<64x1xi32>
    %58 = vector.broadcast %57 : vector<64x1xi32> to vector<64x128xi32>
    %59 = arith.cmpi eq, %6, %58 : vector<64x128xi32>
    %60 = arith.extui %59 : vector<64x128xi1> to vector<64x128xi32>
    %61 = arith.sitofp %60 : vector<64x128xi32> to vector<64x128xf32>
    %62 = arith.truncf %61 : vector<64x128xf32> to vector<64x128xbf16>
    %63 = tpu.concatenate %20, %34, %48, %62 in 1 : vector<64x128xbf16>, vector<64x128xbf16>, vector<64x128xbf16>, vector<64x128xbf16> -> vector<64x512xbf16>
    %c0_16 = arith.constant 0 : index
    %c0_17 = arith.constant 0 : index
    %c0_18 = arith.constant 0 : index
    %64 = vector.load %arg4[%c0_16, %c0_17, %c0_18] : memref<3x512x128xbf16, #tpu.memory_space<vmem>>, vector<1x512x128xbf16>
    %65 = vector.shape_cast %64 : vector<1x512x128xbf16> to vector<512x128xbf16>
    %cst_19 = arith.constant dense<0.000000e+00> : vector<64x128xf32>
    %66 = tpu.matmul %63, %65, %cst_19 {dimension_numbers = #tpu.dot_dimension_numbers<[1], [0], [0], [1], [0, 0, 1, 1], [], []>} : vector<64x512xbf16>, vector<512x128xbf16>, vector<64x128xf32> -> vector<64x128xf32>
    %c1 = arith.constant 1 : index
    %c0_20 = arith.constant 0 : index
    %c0_21 = arith.constant 0 : index
    %67 = vector.load %arg4[%c1, %c0_20, %c0_21] : memref<3x512x128xbf16, #tpu.memory_space<vmem>>, vector<1x512x128xbf16>
    %68 = vector.shape_cast %67 : vector<1x512x128xbf16> to vector<512x128xbf16>
    %cst_22 = arith.constant dense<0.000000e+00> : vector<64x128xf32>
    %69 = tpu.matmul %63, %68, %cst_22 {dimension_numbers = #tpu.dot_dimension_numbers<[1], [0], [0], [1], [0, 0, 1, 1], [], []>} : vector<64x512xbf16>, vector<512x128xbf16>, vector<64x128xf32> -> vector<64x128xf32>
    %70 = arith.addf %66, %69 : vector<64x128xf32>
    %c2 = arith.constant 2 : index
    %c0_23 = arith.constant 0 : index
    %c0_24 = arith.constant 0 : index
    %71 = vector.load %arg4[%c2, %c0_23, %c0_24] : memref<3x512x128xbf16, #tpu.memory_space<vmem>>, vector<1x512x128xbf16>
    %72 = vector.shape_cast %71 : vector<1x512x128xbf16> to vector<512x128xbf16>
    %cst_25 = arith.constant dense<0.000000e+00> : vector<64x128xf32>
    %73 = tpu.matmul %63, %72, %cst_25 {dimension_numbers = #tpu.dot_dimension_numbers<[1], [0], [0], [1], [0, 0, 1, 1], [], []>} : vector<64x512xbf16>, vector<512x128xbf16>, vector<64x128xf32> -> vector<64x128xf32>
    %74 = arith.addf %70, %73 : vector<64x128xf32>
    %c0_26 = arith.constant 0 : index
    %c0_27 = arith.constant 0 : index
    %75 = vector.load %arg5[%c0_26, %c0_27] : memref<64x128xf32, #tpu.memory_space<vmem>>, vector<64x128xf32>
    tpu.vector_store %arg5[%c0_26, %c0_27], %74 {strides = array<i32>} : memref<64x128xf32, #tpu.memory_space<vmem>>, vector<64x128xf32>,
    %c8192_i32 = arith.constant 8192 : i32
    %76 = arith.muli %arg0, %c8192_i32 : i32
    %c8192_i32_28 = arith.constant 8192 : i32
    %77 = arith.addi %76, %c8192_i32_28 : i32
    %c16384_i32 = arith.constant 16384 : i32
    %78 = arith.cmpi sle, %77, %c16384_i32 : i32
    %79 = arith.extui %78 : i1 to i32
    %c0_i32 = arith.constant 0 : i32
    %80 = arith.cmpi ne, %79, %c0_i32 : i32
    scf.if %80 {
      %85 = arith.subf %74, %0 : vector<64x128xf32>
      %86 = arith.mulf %85, %85 : vector<64x128xf32>
      %cst_32 = arith.constant dense<0.000000e+00> : vector<64xf32>
      %87 = vector.multi_reduction <add>, %86, %cst_32 [1] : vector<64x128xf32> to vector<64xf32>
      %88 = vector.shape_cast %87 : vector<64xf32> to vector<64x1xf32>
      %cst_33 = arith.constant dense<0.000000e+00> : vector<1xf32>
      %89 = vector.multi_reduction <add>, %88, %cst_33 [0] : vector<64x1xf32> to vector<1xf32>
      %90 = vector.shape_cast %89 : vector<1xf32> to vector<1x1xf32>
      %91 = vector.shape_cast %90 : vector<1x1xf32> to vector<1x1x1xf32>
      %c0_34 = arith.constant 0 : index
      %c0_35 = arith.constant 0 : index
      %c0_36 = arith.constant 0 : index
      %92 = vector.load %arg6[%c0_34, %c0_35, %c0_36] : memref<1x1x1xf32, #tpu.memory_space<vmem>>, vector<1x1x1xf32>
      tpu.vector_store %arg6[%c0_34, %c0_35, %c0_36], %91 {strides = array<i32>} : memref<1x1x1xf32, #tpu.memory_space<vmem>>, vector<1x1x1xf32>,
    } else {
    }
    %c8192_i32_29 = arith.constant 8192 : i32
    %81 = arith.addi %76, %c8192_i32_29 : i32
    %c16384_i32_30 = arith.constant 16384 : i32
    %82 = arith.cmpi sgt, %81, %c16384_i32_30 : i32
    %83 = arith.extui %82 : i1 to i32
    %c0_i32_31 = arith.constant 0 : i32
    %84 = arith.cmpi ne, %83, %c0_i32_31 : i32
    scf.if %84 {
      %85 = tpu.iota {dimensions = array<i32: 0>} : vector<64x128xi32>
      %86 = tpu.iota {dimensions = array<i32: 1>} : vector<64x128xi32>
      %c128_i32_32 = arith.constant 128 : i32
      %87 = vector.broadcast %c128_i32_32 : i32 to vector<64x128xi32>
      %88 = arith.muli %85, %87 : vector<64x128xi32>
      %89 = vector.broadcast %76 : i32 to vector<64x128xi32>
      %90 = arith.addi %89, %88 : vector<64x128xi32>
      %91 = arith.addi %90, %86 : vector<64x128xi32>
      %c16384_i32_33 = arith.constant 16384 : i32
      %92 = vector.broadcast %c16384_i32_33 : i32 to vector<64x128xi32>
      %93 = arith.cmpi slt, %91, %92 : vector<64x128xi32>
      %94 = arith.extui %93 : vector<64x128xi1> to vector<64x128xi32>
      %95 = arith.sitofp %94 : vector<64x128xi32> to vector<64x128xf32>
      %96 = arith.subf %74, %0 : vector<64x128xf32>
      %97 = arith.mulf %96, %95 : vector<64x128xf32>
      %98 = arith.mulf %97, %97 : vector<64x128xf32>
      %cst_34 = arith.constant dense<0.000000e+00> : vector<64xf32>
      %99 = vector.multi_reduction <add>, %98, %cst_34 [1] : vector<64x128xf32> to vector<64xf32>
      %100 = vector.shape_cast %99 : vector<64xf32> to vector<64x1xf32>
      %cst_35 = arith.constant dense<0.000000e+00> : vector<1xf32>
      %101 = vector.multi_reduction <add>, %100, %cst_35 [0] : vector<64x1xf32> to vector<1xf32>
      %102 = vector.shape_cast %101 : vector<1xf32> to vector<1x1xf32>
      %103 = vector.shape_cast %102 : vector<1x1xf32> to vector<1x1x1xf32>
      %c0_36 = arith.constant 0 : index
      %c0_37 = arith.constant 0 : index
      %c0_38 = arith.constant 0 : index
      %104 = vector.load %arg6[%c0_36, %c0_37, %c0_38] : memref<1x1x1xf32, #tpu.memory_space<vmem>>, vector<1x1x1xf32>
      tpu.vector_store %arg6[%c0_36, %c0_37, %c0_38], %103 {strides = array<i32>} : memref<1x1x1xf32, #tpu.memory_space<vmem>>, vector<1x1x1xf32>,
    } else {
    }
    return
  }
  func.func @transform_0(%arg0: i32) -> (i32, i32) {
    %c0_i32 = arith.constant 0 : i32
    %c0_i32_0 = arith.constant 0 : i32
    return %arg0, %c0_i32 : i32, i32
  }
  func.func @transform_1(%arg0: i32) -> (i32, i32) {
    %c0_i32 = arith.constant 0 : i32
    %c0_i32_0 = arith.constant 0 : i32
    %c0_i32_1 = arith.constant 0 : i32
    return %c0_i32, %c0_i32_0 : i32, i32
  }
  func.func @transform_2(%arg0: i32) -> (i32, i32) {
    %c0_i32 = arith.constant 0 : i32
    %c0_i32_0 = arith.constant 0 : i32
    %c0_i32_1 = arith.constant 0 : i32
    return %c0_i32, %c0_i32_0 : i32, i32
  }
  func.func @transform_3(%arg0: i32) -> (i32, i32, i32) {
    %c0_i32 = arith.constant 0 : i32
    %c0_i32_0 = arith.constant 0 : i32
    %c0_i32_1 = arith.constant 0 : i32
    %c0_i32_2 = arith.constant 0 : i32
    return %c0_i32, %c0_i32_0, %c0_i32_1 : i32, i32, i32
  }
  func.func @transform_4(%arg0: i32) -> (i32, i32) {
    %c0_i32 = arith.constant 0 : i32
    %c0_i32_0 = arith.constant 0 : i32
    return %arg0, %c0_i32 : i32, i32
  }
  func.func @transform_5(%arg0: i32) -> (i32, i32, i32) {
    %c0_i32 = arith.constant 0 : i32
    %c0_i32_0 = arith.constant 0 : i32
    %c0_i32_1 = arith.constant 0 : i32
    return %arg0, %c0_i32, %c0_i32_0 : i32, i32, i32
  }
}

</mosaic_0001>

<bundles_post_ra>
// kernel: tile.8
= control target key start
LH: loop header
LB: loop body
LE: loop exit
PB: predicated region body
PF: predicated region fallthrough
CT: control target
= control target key end

     0   :  { %s22_s0 = inlined_call_operand.vmem [shape: f32[128], index: 0, kind: input, shape index: {}]   ;;  %s23_s1 = inlined_call_operand.vmem [shape: f32[4,128], index: 1, kind: output, shape index: {}]  }
   0x1   :  { %v4_v0 = vld [vmem:[%s22_s0] ss:$0 sm:$0xff] }
   0x2   :  { %5 = vst [vmem:[%s23_s1] sm:$0xf] %v4_v0 }

// kernel: vector_quantize.1
= control target key start
LH: loop header
LB: loop body
LE: loop exit
PB: predicated region body
PF: predicated region fallthrough
CT: control target
= control target key end

     0   :  { %s3533_s18 = smov 0   ;;  %s5079_s0 = inlined_call_operand.vmem [shape: f32[128,128], index: 0, kind: input, shape index: {}]   ;;  %s5080_s1 = inlined_call_operand.vmem [shape: f32[128,512], index: 1, kind: input, shape index: {}]   ;;  %s5081_s2 = inlined_call_operand.vmem [shape: f32[1,512], index: 2, kind: input, shape index: {}]   ;;  %s5082_s3 = inlined_call_operand.vmem [shape: bf16[3,512,128], index: 3, kind: input, shape index: {}]   ;;  %s5083_s4 = inlined_call_operand.vmem [shape: f32[128,128], index: 4, kind: output, shape index: {0}]   ;;  %s5084_s5 = inlined_call_operand.vmem [shape: f32[2,1,1], index: 5, kind: output, shape index: {1}]  }
   0x1 LB: > { %s3539_s19 = sadd.s32 4294967295, %s3498_s18   ;;  %p2711_p0 = scmp.ge.s32.totalorder %s3498_s18, 1  ;;  %s3498_s18 = sphi %s3533_s18, %s16_s18  }
   0x2   : > { %p191_p1 = scmp.lt.s32.totalorder %s3498_s18, 3 }
   0x4   : > { %p192_p2 = pnand %p2711_p0, %p191_p1 }
   0x6   : > { %195 = sbr.rel (%p192_p2) target bundleno = 1410 (0x582), region = 36 }
   0xd   : > { %p234_p3 = scmp.lt.s32.totalorder %s3539_s19, 1  ;;  %v247_v0 = vld [vmem:[%s5080_s1 + $0x8] sm:$0xff]  ;;  %v249_v2 = vld [vmem:[%s5080_s1 + $0x18] sm:$0xff]  ;;  %v246_v5 = vld [vmem:[%s5080_s1] sm:$0xff]  ;;  %v3500_v7 = vmov 0.0   ;;  %s2712_s29 = sshll.u32 %s3539_s19, 3 }
   0xe   : > { %v251_v1 = vld [vmem:[%s5080_s1 + $0x28] sm:$0xff]  ;;  %v253_v4 = vld [vmem:[%s5080_s1 + $0x38] sm:$0xff]  ;;  %v250_v6 = vld [vmem:[%s5080_s1 + $0x20] sm:$0xff]  ;;  %374 = vmatprep.mubr.f32.mxu0 %v3500_v7  ;;  %487 = vmatprep.mubr.f32.mxu1 %v3500_v7  ;;  %p3687_p4 = scmp.lt.s32.totalorder %s2712_s29, 15  ;;  %s3068_s20 = sshll.u32 %s3539_s19, 13 }
   0xf   : > { %v3321_v3 = vpack.c.bf16 %v251_v1, %v247_v0  ;;  %s235_s7 = scalar_select %p234_p3, %s3539_s19, 1  ;;  %v3353_v8 = vpack.c.bf16 %v253_v4, %v249_v2  ;;  %v3323_v9 = vpack.c.bf16 %v250_v6, %v246_v5  ;;  %v248_v10 = vld [vmem:[%s5080_s1 + $0x10] sm:$0xff]  ;;  %v255_v12 = vld [vmem:[%s5080_s1 + $0x48] sm:$0xff]  ;;  %v257_v15 = vld [vmem:[%s5080_s1 + $0x58] sm:$0xff] }
  0x10   : > { %v252_v11 = vld [vmem:[%s5080_s1 + $0x30] sm:$0xff]  ;;  %v259_v14 = vld [vmem:[%s5080_s1 + $0x68] sm:$0xff]  ;;  %v261_v16 = vld [vmem:[%s5080_s1 + $0x78] sm:$0xff]  ;;  %s5205_s29 = smov (!%p3687_p4, %s2712_s29), 15  ;;  %s4947_s21 = sadd.s32 8192, %s3068_s20 }
  0x11   : > { %3322 = vmatprep.subr.bf16.mxu0 %v3321_v3  ;;  %v3355_v13 = vpack.c.bf16 %v252_v11, %v248_v10  ;;  %s3586_s24 = scalar_lea.vmem %s5084_s5, %s235_s7  ;;  %3354 = vmatprep.subr.bf16.mxu1 %v3353_v8  ;;  %v3325_v17 = vpack.c.bf16 %v259_v14, %v255_v12  ;;  %v3357_v18 = vpack.c.bf16 %v261_v16, %v257_v15  ;;  %v254_v19 = vld [vmem:[%s5080_s1 + $0x40] sm:$0xff]  ;;  %v256_v21 = vld [vmem:[%s5080_s1 + $0x50] sm:$0xff]  ;;  %v263_v24 = vld [vmem:[%s5080_s1 + $0x88] sm:$0xff]  ;;  %s2713_s16 = sshll.u32 %s5205_s29, 3 }
  0x12   : > { %3324 = vmatpush1.bf16.msra.mxu0 %v3323_v9  ;;  %v258_v20 = vld [vmem:[%s5080_s1 + $0x60] sm:$0xff]  ;;  %v260_v23 = vld [vmem:[%s5080_s1 + $0x70] sm:$0xff]  ;;  %v267_v25 = vld [vmem:[%s5080_s1 + $0xa8] sm:$0xff]  ;;  %s3763_s23 = scalar_lea.vmem %s5079_s0, %s2713_s16  ;;  %s4970_s26 = scalar_lea.vmem %s5083_s4, %s2713_s16 }
  0x13   : > { %3356 = vmatpush1.bf16.msra.mxu1 %v3355_v13  ;;  %v3327_v22 = vpack.c.bf16 %v258_v20, %v254_v19  ;;  %3326 = vmatprep.subr.bf16.mxu0 %v3325_v17  ;;  %v3359_v26 = vpack.c.bf16 %v260_v23, %v256_v21  ;;  %v3329_v27 = vpack.c.bf16 %v267_v25, %v263_v24  ;;  %v265_v28 = vld [vmem:[%s5080_s1 + $0x98] sm:$0xff]  ;;  %v262_v30 = vld [vmem:[%s5080_s1 + $0x80] sm:$0xff]  ;;  %v264_v33 = vld [vmem:[%s5080_s1 + $0x90] sm:$0xff]  ;;  %p3069_p5 = scmp.gt.s32.totalorder %s4947_s21, 16384 }
  0x14   : > { %3358 = vmatprep.subr.bf16.mxu1 %v3357_v18  ;;  %v269_v29 = vld [vmem:[%s5080_s1 + $0xb8] sm:$0xff]  ;;  %v266_v32 = vld [vmem:[%s5080_s1 + $0xa0] sm:$0xff]  ;;  %v268_v34 = vld [vmem:[%s5080_s1 + $0xb0] sm:$0xff] }
  0x15   : > { %v3361_v31 = vpack.c.bf16 %v269_v29, %v265_v28  ;;  %v3331_v35 = vpack.c.bf16 %v266_v32, %v262_v30  ;;  %v271_v36 = vld [vmem:[%s5080_s1 + $0xc8] sm:$0xff]  ;;  %v273_v38 = vld [vmem:[%s5080_s1 + $0xd8] sm:$0xff]  ;;  %v3363_v39 = vpack.c.bf16 %v268_v34, %v264_v33  ;;  %v270_v42 = vld [vmem:[%s5080_s1 + $0xc0] sm:$0xff] }
  0x16   : > { %3328 = vmatpush1.bf16.msra.mxu0 %v3327_v22  ;;  %v275_v37 = vld [vmem:[%s5080_s1 + $0xe8] sm:$0xff]  ;;  %v277_v41 = vld [vmem:[%s5080_s1 + $0xf8] sm:$0xff]  ;;  %v274_v43 = vld [vmem:[%s5080_s1 + $0xe0] sm:$0xff] }
  0x17   : > { %3360 = vmatpush1.bf16.msra.mxu1 %v3359_v26  ;;  %3330 = vmatprep.subr.bf16.mxu0 %v3329_v27  ;;  %v3333_v40 = vpack.c.bf16 %v275_v37, %v271_v36  ;;  %v3365_v44 = vpack.c.bf16 %v277_v41, %v273_v38  ;;  %v272_v45 = vld [vmem:[%s5080_s1 + $0xd0] sm:$0xff]  ;;  %v279_v47 = vld [vmem:[%s5080_s1 + $0x108] sm:$0xff]  ;;  %v281_v49 = vld [vmem:[%s5080_s1 + $0x118] sm:$0xff]  ;;  %v3335_v51 = vpack.c.bf16 %v274_v43, %v270_v42  ;;  %v538_v42 = vlaneseq }
  0x18   : > { %3362 = vmatprep.subr.bf16.mxu1 %v3361_v31  ;;  %v276_v46 = vld [vmem:[%s5080_s1 + $0xf0] sm:$0xff]  ;;  %v283_v48 = vld [vmem:[%s5080_s1 + $0x128] sm:$0xff]  ;;  %v285_v50 = vld [vmem:[%s5080_s1 + $0x138] sm:$0xff] }
  0x19   : > { %v3367_v52 = vpack.c.bf16 %v276_v46, %v272_v45  ;;  %v3337_v53 = vpack.c.bf16 %v283_v48, %v279_v47  ;;  %v278_v54 = vld [vmem:[%s5080_s1 + $0x100] sm:$0xff]  ;;  %v280_v56 = vld [vmem:[%s5080_s1 + $0x110] sm:$0xff]  ;;  %v3369_v57 = vpack.c.bf16 %v285_v50, %v281_v49  ;;  %v287_v59 = vld [vmem:[%s5080_s1 + $0x148] sm:$0xff]  ;;  %v3820_v43 = vshrl.u32 %v538_v42, 7 }
  0x1a   : > { %3332 = vmatpush1.bf16.msra.mxu0 %v3331_v35  ;;  %v282_v55 = vld [vmem:[%s5080_s1 + $0x120] sm:$0xff]  ;;  %v284_v58 = vld [vmem:[%s5080_s1 + $0x130] sm:$0xff]  ;;  %v291_v60 = vld [vmem:[%s5080_s1 + $0x168] sm:$0xff] }
  0x1b   : > { %3364 = vmatpush1.bf16.msra.mxu1 %v3363_v39  ;;  %3334 = vmatprep.subr.bf16.mxu0 %v3333_v40  ;;  %v289_v61 = vld [vmem:[%s5080_s1 + $0x158] sm:$0xff]  ;;  %v3339_v63 = vpack.c.bf16 %v282_v55, %v278_v54  ;;  %v3371_v0 = vpack.c.bf16 %v284_v58, %v280_v56  ;;  %v3341_v1 = vpack.c.bf16 %v291_v60, %v287_v59  ;;  %v286_v2 = vld [vmem:[%s5080_s1 + $0x140] sm:$0xff]  ;;  %v288_v4 = vld [vmem:[%s5080_s1 + $0x150] sm:$0xff]  ;;  %v552_v46 = vsub.s32 3, %v3820_v43 }
  0x1c   : > { %3366 = vmatprep.subr.bf16.mxu1 %v3365_v44  ;;  %v293_v62 = vld [vmem:[%s5080_s1 + $0x178] sm:$0xff]  ;;  %v290_v3 = vld [vmem:[%s5080_s1 + $0x160] sm:$0xff]  ;;  %v292_v6 = vld [vmem:[%s5080_s1 + $0x170] sm:$0xff]  ;;  %5125 = vst [vmem:[#allocation10_spill] sm:$0xff] %v3820_v43  ;;  %v540_v44 = vsub.s32 0, %v3820_v43  ;;  %v544_v54 = vsub.s32 1, %v3820_v43 }
  0x1d   : > { %v3373_v5 = vpack.c.bf16 %v293_v62, %v289_v61  ;;  %v295_v8 = vld [vmem:[%s5080_s1 + $0x188] sm:$0xff]  ;;  %v297_v10 = vld [vmem:[%s5080_s1 + $0x198] sm:$0xff]  ;;  %v3343_v12 = vpack.c.bf16 %v290_v3, %v286_v2  ;;  %v294_v13 = vld [vmem:[%s5080_s1 + $0x180] sm:$0xff]  ;;  %v3375_v14 = vpack.c.bf16 %v292_v6, %v288_v4 }
  0x1e   : > { %3336 = vmatpush1.bf16.msra.mxu0 %v3335_v51  ;;  %v299_v9 = vld [vmem:[%s5080_s1 + $0x1a8] sm:$0xff]  ;;  %v301_v11 = vld [vmem:[%s5080_s1 + $0x1b8] sm:$0xff]  ;;  %v298_v16 = vld [vmem:[%s5080_s1 + $0x1a0] sm:$0xff] }
  0x1f   : > { %3368 = vmatpush1.bf16.msra.mxu1 %v3367_v52  ;;  %3338 = vmatprep.subr.bf16.mxu0 %v3337_v53  ;;  %v3345_v15 = vpack.c.bf16 %v299_v9, %v295_v8  ;;  %v296_v17 = vld [vmem:[%s5080_s1 + $0x190] sm:$0xff]  ;;  %v3377_v19 = vpack.c.bf16 %v301_v11, %v297_v10  ;;  %v303_v20 = vld [vmem:[%s5080_s1 + $0x1c8] sm:$0xff]  ;;  %v305_v22 = vld [vmem:[%s5080_s1 + $0x1d8] sm:$0xff]  ;;  %v3347_v26 = vpack.c.bf16 %v298_v16, %v294_v13 }
  0x20   : > { %3370 = vmatprep.subr.bf16.mxu1 %v3369_v57  ;;  %v300_v18 = vld [vmem:[%s5080_s1 + $0x1b0] sm:$0xff]  ;;  %v307_v21 = vld [vmem:[%s5080_s1 + $0x1e8] sm:$0xff]  ;;  %v309_v23 = vld [vmem:[%s5080_s1 + $0x1f8] sm:$0xff] }
  0x21   : > { %v302_v24 = vld [vmem:[%s5080_s1 + $0x1c0] sm:$0xff]  ;;  %v304_v27 = vld [vmem:[%s5080_s1 + $0x1d0] sm:$0xff]  ;;  %v3379_v29 = vpack.c.bf16 %v300_v18, %v296_v17  ;;  %v3349_v30 = vpack.c.bf16 %v307_v21, %v303_v20  ;;  %v3381_v31 = vpack.c.bf16 %v309_v23, %v305_v22  ;;  %v3769_v35 = vld [vmem:[%s3763_s23 + $0x8] sm:$0xff] }
  0x22   : > { %3340 = vmatpush1.bf16.msra.mxu0 %v3339_v63  ;;  %v306_v25 = vld [vmem:[%s5080_s1 + $0x1e0] sm:$0xff]  ;;  %v308_v28 = vld [vmem:[%s5080_s1 + $0x1f0] sm:$0xff]  ;;  %5118 = vst [vmem:[#allocation3_spill] sm:$0xff] %v3769_v35  ;;  %v3783_v37 = vld [vmem:[%s3763_s23 + $0x18] sm:$0xff] }
  0x23   : > { %3372 = vmatpush1.bf16.msra.mxu1 %v3371_v0  ;;  %3342 = vmatprep.subr.bf16.mxu0 %v3341_v1  ;;  %v3351_v32 = vpack.c.bf16 %v306_v25, %v302_v24  ;;  %v3383_v33 = vpack.c.bf16 %v308_v28, %v304_v27  ;;  %v3766_v34 = vld [vmem:[%s3763_s23] sm:$0xff]  ;;  %v3776_v36 = vld [vmem:[%s3763_s23 + $0x10] sm:$0xff]  ;;  %5120 = vst [vmem:[#allocation5_spill] sm:$0xff] %v3783_v37  ;;  %v3797_v39 = vld [vmem:[%s3763_s23 + $0x28] sm:$0xff] }
  0x24   : > { %3374 = vmatprep.subr.bf16.mxu1 %v3373_v5  ;;  %5117 = vst [vmem:[#allocation2_spill] sm:$0xff] %v3766_v34  ;;  %5119 = vst [vmem:[#allocation4_spill] sm:$0xff] %v3776_v36  ;;  %v3790_v38 = vld [vmem:[%s3763_s23 + $0x20] sm:$0xff]  ;;  %v3804_v40 = vld [vmem:[%s3763_s23 + $0x30] sm:$0xff] }
  0x25   : > { %5121 = vst [vmem:[#allocation6_spill] sm:$0xff] %v3790_v38  ;;  %5122 = vst [vmem:[#allocation7_spill] sm:$0xff] %v3797_v39  ;;  %v3811_v41 = vld [vmem:[%s3763_s23 + $0x38] sm:$0xff]  ;;  %v536_v45 = vld [vmem:[%s5081_s2] sm:$0xf] }
  0x26   : > { %3344 = vmatpush1.bf16.msra.mxu0 %v3343_v12  ;;  %5123 = vst [vmem:[#allocation8_spill] sm:$0xff] %v3804_v40  ;;  %5124 = vst [vmem:[#allocation9_spill] sm:$0xff] %v3811_v41  ;;  %v3827_v47 = vrot.slane %v536_v45, %v540_v44  ;;  %v3830_v48 = vrot.slane %v536_v45, %v552_v46  ;;  %v3845_v59 = vrot.slane %v536_v45, %v544_v54 }
  0x27   : > { %3376 = vmatpush1.bf16.msra.mxu1 %v3375_v14  ;;  %3346 = vmatprep.subr.bf16.mxu0 %v3345_v15 }
  0x28   : > { %3378 = vmatprep.subr.bf16.mxu1 %v3377_v19 }
  0x2a   : > { %3348 = vmatpush1.bf16.msra.mxu0 %v3347_v26 }
  0x2b   : > { %3380 = vmatpush1.bf16.msra.mxu1 %v3379_v29  ;;  %3350 = vmatprep.subr.bf16.mxu0 %v3349_v30 }
  0x2c   : > { %3382 = vmatprep.subr.bf16.mxu1 %v3381_v31 }
  0x2e   : > { %3352 = vmatpush1.bf16.msra.mxu0 %v3351_v32 }
  0x2f   : > { %3384 = vmatpush1.bf16.msra.mxu1 %v3383_v33 }
  0x31   : > { %375 = vmatmul.mubr.f32.vlgmr.msra.gmra.mrb[0].mxu0 %v3766_v34 }
  0x32   : > { %488 = vmatmul.mubr.f32.vlgmr.msra.gmra.mrb[0].mxu1 %v3766_v34  ;;  %380 = vmatprep.mubr.f32.mxu0 %v3500_v7 }
  0x33   : > { %493 = vmatprep.mubr.f32.mxu1 %v3500_v7 }
  0x35   : > { %381 = vmatmul.mubr.f32.gmra.mrb[2].mxu0 %v3769_v35 }
  0x36   : > { %494 = vmatmul.mubr.f32.gmra.mrb[2].mxu1 %v3769_v35  ;;  %386 = vmatprep.mubr.f32.mxu0 %v3500_v7 }
  0x37   : > { %499 = vmatprep.mubr.f32.mxu1 %v3500_v7 }
  0x39   : > { %387 = vmatmul.mubr.f32.gmra.mrb[4].mxu0 %v3776_v36 }
  0x3a   : > { %392 = vmatprep.mubr.f32.mxu0 %v3500_v7  ;;  %500 = vmatmul.mubr.f32.gmra.mrb[4].mxu1 %v3776_v36 }
  0x3b   : > { %505 = vmatprep.mubr.f32.mxu1 %v3500_v7 }
  0x3d   : > { %393 = vmatmul.mubr.f32.gmra.mrb[6].mxu0 %v3783_v37 }
  0x3e   : > { %506 = vmatmul.mubr.f32.gmra.mrb[6].mxu1 %v3783_v37  ;;  %398 = vmatprep.mubr.f32.mxu0 %v3500_v7 }
  0x3f   : > { %511 = vmatprep.mubr.f32.mxu1 %v3500_v7 }
  0x41   : > { %399 = vmatmul.mubr.f32.gmra.mrb[8].mxu0 %v3790_v38 }
  0x42   : > { %404 = vmatprep.mubr.f32.mxu0 %v3500_v7  ;;  %512 = vmatmul.mubr.f32.gmra.mrb[8].mxu1 %v3790_v38 }
  0x43   : > { %517 = vmatprep.mubr.f32.mxu1 %v3500_v7 }
  0x45   : > { %405 = vmatmul.mubr.f32.gmra.mrb[10].mxu0 %v3797_v39 }
  0x46   : > { %518 = vmatmul.mubr.f32.gmra.mrb[10].mxu1 %v3797_v39  ;;  %410 = vmatprep.mubr.f32.mxu0 %v3500_v7 }
  0x47   : > { %523 = vmatprep.mubr.f32.mxu1 %v3500_v7 }
  0x49   : > { %411 = vmatmul.mubr.f32.gmra.mrb[12].mxu0 %v3804_v40 }
  0x4a   : > { %416 = vmatprep.mubr.f32.mxu0 %v3500_v7  ;;  %524 = vmatmul.mubr.f32.gmra.mrb[12].mxu1 %v3804_v40 }
  0x4b   : > { %529 = vmatprep.mubr.f32.mxu1 %v3500_v7  ;;  %v548_v7 = vsub.s32 2, %v3820_v43 }
  0x4d   : > { %417 = vmatmul.mubr.f32.gmra.mrb[14].mxu0 %v3811_v41  ;;  %v3835_v52 = vrot.slane %v536_v45, %v548_v7 }
  0x4e   : > { %530 = vmatmul.mubr.f32.gmra.mrb[14].mxu1 %v3811_v41 }
 0x104   : > { %v376_v49 = vpop.f32.mrb[0].mxu0 }
 0x105   : > { %v3833_v50 = vadd.f32 %v3827_v47, %v376_v49  ;;  %v489_v51 = vpop.f32.mrb[0].mxu1  ;;  %v378_v53 = vpop.f32.mrb[1].mxu0 }
 0x106   : > { %v491_v55 = vpop.f32.mrb[1].mxu1  ;;  %v3843_v58 = vadd.f32 %v3835_v52, %v489_v51  ;;  %v3853_v1 = vadd.f32 %v3845_v59, %v378_v53 }
 0x107   : > { %v3839_v56 = vadd.f32 %v3830_v48, %v491_v55  ;;  %592 = vmin.xlane.f32.xlu0 %v3833_v50 }
 0x108   : > { %v382_v57 = vpop.f32.mrb[2].mxu0 }
 0x109   : > { %1108 = vmin.xlane.f32.xlu1 %v3839_v56  ;;  %v3849_v60 = vadd.f32 %v3827_v47, %v382_v57  ;;  %v384_v61 = vpop.f32.mrb[3].mxu0  ;;  %v495_v62 = vpop.f32.mrb[2].mxu1 }
 0x10a   : > { %v497_v63 = vpop.f32.mrb[3].mxu1  ;;  %v3856_v2 = vadd.f32 %v3835_v52, %v495_v62  ;;  %v3861_v8 = vadd.f32 %v3845_v59, %v384_v61 }
 0x10b   : > { %936 = vmin.xlane.f32.xlu0 %v3843_v58  ;;  %v3865_v12 = vadd.f32 %v3830_v48, %v497_v63 }
 0x10c   : > { %v388_v0 = vpop.f32.mrb[4].mxu0 }
 0x10d   : > { %594 = vmin.xlane.f32.xlu1 %v3849_v60  ;;  %v390_v3 = vpop.f32.mrb[5].mxu0  ;;  %v501_v4 = vpop.f32.mrb[4].mxu1  ;;  %v3869_v13 = vadd.f32 %v3827_v47, %v388_v0 }
 0x10e   : > { %v503_v5 = vpop.f32.mrb[5].mxu1  ;;  %v3876_v19 = vadd.f32 %v3835_v52, %v501_v4  ;;  %v3885_v26 = vadd.f32 %v3845_v59, %v390_v3 }
 0x10f   : > { %764 = vmin.xlane.f32.xlu0 %v3853_v1  ;;  %v3893_v32 = vadd.f32 %v3830_v48, %v503_v5 }
 0x110   : > { %v394_v6 = vpop.f32.mrb[6].mxu0 }
 0x111   : > { %938 = vmin.xlane.f32.xlu1 %v3856_v2  ;;  %v396_v9 = vpop.f32.mrb[7].mxu0  ;;  %v507_v10 = vpop.f32.mrb[6].mxu1  ;;  %v3873_v15 = vadd.f32 %v3827_v47, %v394_v6 }
 0x112   : > { %v509_v11 = vpop.f32.mrb[7].mxu1  ;;  %v3881_v21 = vadd.f32 %v3835_v52, %v507_v10  ;;  %v3889_v30 = vadd.f32 %v3845_v59, %v396_v9 }
 0x113   : > { %766 = vmin.xlane.f32.xlu0 %v3861_v8  ;;  %v3897_v46 = vadd.f32 %v3830_v48, %v509_v11 }
 0x114   : > { %v400_v14 = vpop.f32.mrb[8].mxu0 }
 0x115   : > { %1110 = vmin.xlane.f32.xlu1 %v3865_v12  ;;  %v402_v16 = vpop.f32.mrb[9].mxu0  ;;  %v513_v17 = vpop.f32.mrb[8].mxu1  ;;  %v3901_v7 = vadd.f32 %v3827_v47, %v400_v14 }
 0x116   : > { %v515_v18 = vpop.f32.mrb[9].mxu1  ;;  %v3908_v51 = vadd.f32 %v3835_v52, %v513_v17  ;;  %v3917_v54 = vadd.f32 %v3845_v59, %v402_v16 }
 0x117   : > { %596 = vmin.xlane.f32.xlu0 %v3869_v13  ;;  %v3925_v57 = vadd.f32 %v3830_v48, %v515_v18 }
 0x118   : > { %v406_v20 = vpop.f32.mrb[10].mxu0 }
 0x119   : > { %598 = vmin.xlane.f32.xlu1 %v3873_v15  ;;  %v408_v22 = vpop.f32.mrb[11].mxu0  ;;  %v519_v23 = vpop.f32.mrb[10].mxu1  ;;  %v3905_v49 = vadd.f32 %v3827_v47, %v406_v20 }
 0x11a   : > { %v521_v24 = vpop.f32.mrb[11].mxu1  ;;  %v3913_v53 = vadd.f32 %v3835_v52, %v519_v23  ;;  %v3921_v55 = vadd.f32 %v3845_v59, %v408_v22 }
 0x11b   : > { %940 = vmin.xlane.f32.xlu0 %v3876_v19  ;;  %v3929_v61 = vadd.f32 %v3830_v48, %v521_v24 }
 0x11c   : > { %v412_v25 = vpop.f32.mrb[12].mxu0 }
 0x11d   : > { %942 = vmin.xlane.f32.xlu1 %v3881_v21  ;;  %v414_v27 = vpop.f32.mrb[13].mxu0  ;;  %v525_v28 = vpop.f32.mrb[12].mxu1  ;;  %v3933_v62 = vadd.f32 %v3827_v47, %v412_v25 }
 0x11e   : > { %v527_v29 = vpop.f32.mrb[13].mxu1  ;;  %v3941_v0 = vadd.f32 %v3845_v59, %v414_v27  ;;  %v3957_v5 = vadd.f32 %v3835_v52, %v525_v28 }
 0x11f   : > { %768 = vmin.xlane.f32.xlu0 %v3885_v26  ;;  %v3948_v4 = vadd.f32 %v3830_v48, %v527_v29 }
 0x120   : > { %v418_v31 = vpop.f32.mrb[14].mxu0 }
 0x121   : > { %770 = vmin.xlane.f32.xlu1 %v3889_v30  ;;  %v420_v33 = vpop.f32.mrb[15].mxu0  ;;  %v531_v44 = vpop.f32.mrb[14].mxu1  ;;  %v3937_v63 = vadd.f32 %v3827_v47, %v418_v31 }
 0x122   : > { %v533_v45 = vpop.f32.mrb[15].mxu1  ;;  %v3945_v3 = vadd.f32 %v3845_v59, %v420_v33  ;;  %v3960_v6 = vadd.f32 %v3835_v52, %v531_v44  ;;  %v3966_v59 = vand.u32 127, %v538_v42 }
 0x123   : > { %1112 = vmin.xlane.f32.xlu0 %v3893_v32  ;;  %v3953_v47 = vadd.f32 %v3830_v48, %v533_v45 }
 0x124   : > { %5126 = vst [vmem:[#allocation11_spill] sm:$0xff] %v3966_v59 }
 0x125   : > { %1114 = vmin.xlane.f32.xlu1 %v3897_v46 }
 0x127   : > { %600 = vmin.xlane.f32.xlu0 %v3901_v7 }
 0x129   : > { %602 = vmin.xlane.f32.xlu1 %v3905_v49 }
 0x12b   : > { %944 = vmin.xlane.f32.xlu0 %v3908_v51 }
 0x12d   : > { %946 = vmin.xlane.f32.xlu1 %v3913_v53 }
 0x12f   : > { %772 = vmin.xlane.f32.xlu0 %v3917_v54 }
 0x131   : > { %774 = vmin.xlane.f32.xlu1 %v3921_v55 }
 0x133   : > { %1116 = vmin.xlane.f32.xlu0 %v3925_v57 }
 0x135   : > { %1118 = vmin.xlane.f32.xlu1 %v3929_v61 }
 0x137   : > { %604 = vmin.xlane.f32.xlu0 %v3933_v62 }
 0x139   : > { %606 = vmin.xlane.f32.xlu1 %v3937_v63 }
 0x13b   : > { %776 = vmin.xlane.f32.xlu0 %v3941_v0 }
 0x13d   : > { %778 = vmin.xlane.f32.xlu1 %v3945_v3 }
 0x13f   : > { %1120 = vmin.xlane.f32.xlu0 %v3948_v4 }
 0x141   : > { %1122 = vmin.xlane.f32.xlu1 %v3953_v47 }
 0x143   : > { %948 = vmin.xlane.f32.xlu0 %v3957_v5 }
 0x145   : > { %950 = vmin.xlane.f32.xlu1 %v3960_v6 }
 0x194   : > { %v593_v9 = vpop.xlane.xlu0 %592 }
 0x195   : > { %vm608_vm0 = vcmp.eq.f32.partialorder %v3833_v50, %v593_v9 }
 0x196   : > { %v3970_v48 = vsel %vm608_vm0, %v3966_v59, 128  ;;  %v1109_v10 = vpop.xlane.xlu1 %1108 }
 0x197   : > { %v625_v11 = vshra.s32 %v3970_v48, 16  ;;  %vm1124_vm2 = vcmp.eq.f32.partialorder %v3839_v56, %v1109_v10 }
 0x198   : > { %v937_v52 = vpop.xlane.xlu0 %936  ;;  %v3991_v22 = vsel %vm1124_vm2, %v3966_v59, 128 }
 0x199   : > { %vm952_vm1 = vcmp.eq.f32.partialorder %v3843_v58, %v937_v52  ;;  %v3974_v14 = vcvt.s32.f32 %v625_v11 }
 0x19a   : > { %v3977_v16 = vsel %vm952_vm1, %v3966_v59, 128  ;;  %v595_v17 = vpop.xlane.xlu1 %594 }
 0x19b   : > { %vm609_vm3 = vcmp.eq.f32.partialorder %v3849_v60, %v595_v17  ;;  %628 = vmin.xlane.f32.xlu0 %v3974_v14  ;;  %v969_v42 = vshra.s32 %v3977_v16, 16 }
 0x19c   : > { %v3984_v50 = vsel %vm609_vm3, %v3966_v59, 128  ;;  %v765_v18 = vpop.xlane.xlu0 %764 }
 0x19d   : > { %vm780_vm4 = vcmp.eq.f32.partialorder %v3853_v1, %v765_v18  ;;  %v3987_v58 = vcvt.s32.f32 %v969_v42  ;;  %v639_v20 = vshra.s32 %v3984_v50, 16 }
 0x19e   : > { %v3994_v56 = vsel %vm780_vm4, %v3966_v59, 128  ;;  %v939_v60 = vpop.xlane.xlu1 %938 }
 0x19f   : > { %vm953_vm5 = vcmp.eq.f32.partialorder %v3856_v2, %v939_v60  ;;  %972 = vmin.xlane.f32.xlu0 %v3987_v58  ;;  %v3998_v23 = vcvt.s32.f32 %v639_v20  ;;  %v797_v24 = vshra.s32 %v3994_v56, 16  ;;  %v1141_v2 = vshra.s32 %v3991_v22, 16 }
 0x1a0   : > { %v4002_v1 = vsel %vm953_vm5, %v3966_v59, 128  ;;  %v767_v25 = vpop.xlane.xlu0 %766 }
 0x1a1   : > { %vm781_vm6 = vcmp.eq.f32.partialorder %v3861_v8, %v767_v25  ;;  %642 = vmin.xlane.f32.xlu1 %v3998_v23  ;;  %v4006_v27 = vcvt.s32.f32 %v797_v24  ;;  %v983_v28 = vshra.s32 %v4002_v1, 16  ;;  %v4023_v9 = vcvt.s32.f32 %v1141_v2 }
 0x1a2   : > { %v4011_v29 = vsel %vm781_vm6, %v3966_v59, 128  ;;  %v1111_v31 = vpop.xlane.xlu1 %1110 }
 0x1a3   : > { %vm1125_vm7 = vcmp.eq.f32.partialorder %v3865_v12, %v1111_v31  ;;  %800 = vmin.xlane.f32.xlu0 %v4006_v27  ;;  %v4015_v33 = vcvt.s32.f32 %v983_v28  ;;  %v811_v8 = vshra.s32 %v4011_v29, 16 }
 0x1a4   : > { %v4019_v44 = vsel %vm1125_vm7, %v3966_v59, 128  ;;  %v597_v45 = vpop.xlane.xlu0 %596 }
 0x1a5   : > { %vm610_vm8 = vcmp.eq.f32.partialorder %v3869_v13, %v597_v45  ;;  %986 = vmin.xlane.f32.xlu1 %v4015_v33  ;;  %v4025_v10 = vcvt.s32.f32 %v811_v8  ;;  %v1155_v17 = vshra.s32 %v4019_v44, 16 }
 0x1a6   : > { %v4028_v12 = vsel %vm610_vm8, %v3966_v59, 128  ;;  %v599_v11 = vpop.xlane.xlu1 %598 }
 0x1a7   : > { %vm611_vm9 = vcmp.eq.f32.partialorder %v3873_v15, %v599_v11  ;;  %1144 = vmin.xlane.f32.xlu0 %v4023_v9  ;;  %v653_v52 = vshra.s32 %v4028_v12, 16  ;;  %v4046_v60 = vcvt.s32.f32 %v1155_v17 }
 0x1a8   : > { %v4035_v13 = vsel %vm611_vm9, %v3966_v59, 128  ;;  %v941_v42 = vpop.xlane.xlu0 %940 }
 0x1a9   : > { %vm954_vm10 = vcmp.eq.f32.partialorder %v3876_v19, %v941_v42  ;;  %814 = vmin.xlane.f32.xlu1 %v4025_v10  ;;  %v4039_v18 = vcvt.s32.f32 %v653_v52  ;;  %v667_v25 = vshra.s32 %v4035_v13, 16 }
 0x1aa   : > { %v4042_v20 = vsel %vm954_vm10, %v3966_v59, 128  ;;  %v943_v15 = vpop.xlane.xlu1 %942 }
 0x1ab   : > { %vm955_vm11 = vcmp.eq.f32.partialorder %v3881_v21, %v943_v15  ;;  %656 = vmin.xlane.f32.xlu0 %v4039_v18  ;;  %v997_v24 = vshra.s32 %v4042_v20, 16  ;;  %v4062_v8 = vcvt.s32.f32 %v667_v25 }
 0x1ac   : > { %v4051_v19 = vsel %vm955_vm11, %v3966_v59, 128  ;;  %v769_v28 = vpop.xlane.xlu0 %768 }
 0x1ad   : > { %vm782_vm12 = vcmp.eq.f32.partialorder %v3885_v26, %v769_v28  ;;  %1158 = vmin.xlane.f32.xlu1 %v4046_v60  ;;  %v4055_v2 = vcvt.s32.f32 %v997_v24  ;;  %v1011_v11 = vshra.s32 %v4051_v19, 16 }
 0x1ae   : > { %v4058_v21 = vsel %vm782_vm12, %v3966_v59, 128  ;;  %v771_v31 = vpop.xlane.xlu1 %770 }
 0x1af   : > { %vm783_vm13 = vcmp.eq.f32.partialorder %v3889_v30, %v771_v31  ;;  %1000 = vmin.xlane.f32.xlu0 %v4055_v2  ;;  %v825_v45 = vshra.s32 %v4058_v21, 16  ;;  %v4078_v15 = vcvt.s32.f32 %v1011_v11 }
 0x1b0   : > { %v4067_v26 = vsel %vm783_vm13, %v3966_v59, 128  ;;  %v1113_v52 = vpop.xlane.xlu0 %1112 }
 0x1b1   : > { %vm1126_vm14 = vcmp.eq.f32.partialorder %v3893_v32, %v1113_v52  ;;  %670 = vmin.xlane.f32.xlu1 %v4062_v8  ;;  %v4071_v17 = vcvt.s32.f32 %v825_v45  ;;  %v839_v25 = vshra.s32 %v4067_v26, 16 }
 0x1b2   : > { %v4074_v30 = vsel %vm1126_vm14, %v3966_v59, 128  ;;  %v1115_v42 = vpop.xlane.xlu1 %1114 }
 0x1b3   : > { %vm1127_vm15 = vcmp.eq.f32.partialorder %v3897_v46, %v1115_v42  ;;  %828 = vmin.xlane.f32.xlu0 %v4071_v17  ;;  %v1169_v24 = vshra.s32 %v4074_v30, 16  ;;  %v4094_v11 = vcvt.s32.f32 %v839_v25 }
 0x1b4   : > { %v4083_v32 = vsel %vm1127_vm15, %v3966_v59, 128  ;;  %v601_v28 = vpop.xlane.xlu0 %600 }
 0x1b5   : > { %vm612_vm0 = vcmp.eq.f32.partialorder %v3901_v7, %v601_v28  ;;  %1014 = vmin.xlane.f32.xlu1 %v4078_v15  ;;  %v4087_v31 = vcvt.s32.f32 %v1169_v24  ;;  %v1183_v42 = vshra.s32 %v4083_v32, 16 }
 0x1b6   : > { %v4090_v46 = vsel %vm612_vm0, %v3966_v59, 128  ;;  %v603_v45 = vpop.xlane.xlu1 %602 }
 0x1b7   : > { %vm613_vm1 = vcmp.eq.f32.partialorder %v3905_v49, %v603_v45  ;;  %1172 = vmin.xlane.f32.xlu0 %v4087_v31  ;;  %v681_v52 = vshra.s32 %v4090_v46, 16  ;;  %v4110_v25 = vcvt.s32.f32 %v1183_v42 }
 0x1b8   : > { %v4099_v7 = vsel %vm613_vm1, %v3966_v59, 128  ;;  %v945_v28 = vpop.xlane.xlu0 %944 }
 0x1b9   : > { %vm956_vm2 = vcmp.eq.f32.partialorder %v3908_v51, %v945_v28  ;;  %842 = vmin.xlane.f32.xlu1 %v4094_v11  ;;  %v4103_v24 = vcvt.s32.f32 %v681_v52  ;;  %v695_v41 = vshra.s32 %v4099_v7, 16 }
 0x1ba   : > { %v4106_v49 = vsel %vm956_vm2, %v3966_v59, 128  ;;  %v947_v45 = vpop.xlane.xlu1 %946 }
 0x1bb   : > { %vm957_vm3 = vcmp.eq.f32.partialorder %v3913_v53, %v947_v45  ;;  %684 = vmin.xlane.f32.xlu0 %v4103_v24  ;;  %v1025_v43 = vshra.s32 %v4106_v49, 16  ;;  %v4126_v42 = vcvt.s32.f32 %v695_v41 }
 0x1bc   : > { %v4115_v51 = vsel %vm957_vm3, %v3966_v59, 128  ;;  %v773_v28 = vpop.xlane.xlu0 %772 }
 0x1bd   : > { %vm784_vm4 = vcmp.eq.f32.partialorder %v3917_v54, %v773_v28  ;;  %1186 = vmin.xlane.f32.xlu1 %v4110_v25  ;;  %v4119_v52 = vcvt.s32.f32 %v1025_v43  ;;  %v1039_v39 = vshra.s32 %v4115_v51, 16 }
 0x1be   : > { %v4122_v53 = vsel %vm784_vm4, %v3966_v59, 128  ;;  %v775_v45 = vpop.xlane.xlu1 %774 }
 0x1bf   : > { %vm785_vm5 = vcmp.eq.f32.partialorder %v3921_v55, %v775_v45  ;;  %1028 = vmin.xlane.f32.xlu0 %v4119_v52  ;;  %v853_v40 = vshra.s32 %v4122_v53, 16  ;;  %v4142_v41 = vcvt.s32.f32 %v1039_v39 }
 0x1c0   : > { %v4131_v54 = vsel %vm785_vm5, %v3966_v59, 128  ;;  %v1117_v28 = vpop.xlane.xlu0 %1116 }
 0x1c1   : > { %vm1128_vm6 = vcmp.eq.f32.partialorder %v3925_v57, %v1117_v28  ;;  %698 = vmin.xlane.f32.xlu1 %v4126_v42  ;;  %v4135_v43 = vcvt.s32.f32 %v853_v40  ;;  %v867_v37 = vshra.s32 %v4131_v54, 16 }
 0x1c2   : > { %v4138_v55 = vsel %vm1128_vm6, %v3966_v59, 128  ;;  %v1119_v45 = vpop.xlane.xlu1 %1118 }
 0x1c3   : > { %vm1129_vm7 = vcmp.eq.f32.partialorder %v3929_v61, %v1119_v45  ;;  %856 = vmin.xlane.f32.xlu0 %v4135_v43  ;;  %v1197_v38 = vshra.s32 %v4138_v55, 16  ;;  %v4158_v39 = vcvt.s32.f32 %v867_v37 }
 0x1c4   : > { %v4147_v57 = vsel %vm1129_vm7, %v3966_v59, 128  ;;  %v605_v28 = vpop.xlane.xlu0 %604 }
 0x1c5   : > { %5127 = vst [vmem:[#allocation12_spill] sm:$0xff] %v4147_v57  ;;  %vm614_vm8 = vcmp.eq.f32.partialorder %v3933_v62, %v605_v28  ;;  %1042 = vmin.xlane.f32.xlu1 %v4142_v41  ;;  %v4151_v40 = vcvt.s32.f32 %v1197_v38  ;;  %v1211_v36 = vshra.s32 %v4147_v57, 16 }
 0x1c6   : > { %v4154_v61 = vsel %vm614_vm8, %v3966_v59, 128  ;;  %v607_v45 = vpop.xlane.xlu1 %606 }
 0x1c7   : > { %vm615_vm9 = vcmp.eq.f32.partialorder %v3937_v63, %v607_v45  ;;  %1200 = vmin.xlane.f32.xlu0 %v4151_v40  ;;  %v709_v35 = vshra.s32 %v4154_v61, 16  ;;  %v4174_v37 = vcvt.s32.f32 %v1211_v36 }
 0x1c8   : > { %v4163_v62 = vsel %vm615_vm9, %v3966_v59, 128  ;;  %v777_v28 = vpop.xlane.xlu0 %776 }
 0x1c9   : > { %5128 = vst [vmem:[#allocation13_spill] sm:$0xff] %v4163_v62  ;;  %vm786_vm10 = vcmp.eq.f32.partialorder %v3941_v0, %v777_v28  ;;  %870 = vmin.xlane.f32.xlu1 %v4158_v39  ;;  %v4167_v38 = vcvt.s32.f32 %v709_v35  ;;  %v723_v57 = vshra.s32 %v4163_v62, 16 }
 0x1ca   : > { %v4170_v63 = vsel %vm786_vm10, %v3966_v59, 128  ;;  %v779_v45 = vpop.xlane.xlu1 %778 }
 0x1cb   : > { %5129 = vst [vmem:[#allocation14_spill] sm:$0xff] %v4167_v38  ;;  %vm787_vm11 = vcmp.eq.f32.partialorder %v3945_v3, %v779_v45  ;;  %712 = vmin.xlane.f32.xlu0 %v4167_v38  ;;  %v881_v34 = vshra.s32 %v4170_v63, 16  ;;  %v4190_v36 = vcvt.s32.f32 %v723_v57 }
 0x1cc   : > { %v4179_v0 = vsel %vm787_vm11, %v3966_v59, 128  ;;  %v1121_v28 = vpop.xlane.xlu0 %1120 }
 0x1cd   : > { %5130 = vst [vmem:[#allocation15_spill] sm:$0xff] %v4179_v0  ;;  %vm1130_vm12 = vcmp.eq.f32.partialorder %v3948_v4, %v1121_v28  ;;  %1214 = vmin.xlane.f32.xlu1 %v4174_v37  ;;  %v4183_v35 = vcvt.s32.f32 %v881_v34  ;;  %v895_v38 = vshra.s32 %v4179_v0, 16 }
 0x1ce   : > { %v4186_v3 = vsel %vm1130_vm12, %v3966_v59, 128  ;;  %v1123_v45 = vpop.xlane.xlu1 %1122 }
 0x1cf   : > { %5131 = vst [vmem:[#allocation16_spill] sm:$0xff] %v4183_v35  ;;  %vm1131_vm13 = vcmp.eq.f32.partialorder %v3953_v47, %v1123_v45  ;;  %884 = vmin.xlane.f32.xlu0 %v4183_v35  ;;  %v1225_v62 = vshra.s32 %v4186_v3, 16  ;;  %v4206_v57 = vcvt.s32.f32 %v895_v38 }
 0x1d0   : > { %v4195_v4 = vsel %vm1131_vm13, %v3966_v59, 128  ;;  %v949_v28 = vpop.xlane.xlu0 %948 }
 0x1d1   : > { %5132 = vst [vmem:[#allocation17_spill] sm:$0xff] %v4195_v4  ;;  %vm958_vm14 = vcmp.eq.f32.partialorder %v3957_v5, %v949_v28  ;;  %726 = vmin.xlane.f32.xlu1 %v4190_v36  ;;  %v4199_v34 = vcvt.s32.f32 %v1225_v62  ;;  %5133 = vst [vmem:[#allocation18_spill] sm:$0xff] %v4206_v57  ;;  %v1239_v35 = vshra.s32 %v4195_v4, 16 }
 0x1d2   : > { %v4202_v47 = vsel %vm958_vm14, %v3966_v59, 128  ;;  %v951_v45 = vpop.xlane.xlu1 %950 }
 0x1d3   : > { %vm959_vm15 = vcmp.eq.f32.partialorder %v3960_v6, %v951_v45  ;;  %1228 = vmin.xlane.f32.xlu0 %v4199_v34  ;;  %v1053_v0 = vshra.s32 %v4202_v47, 16  ;;  %v4217_v28 = vcvt.s32.f32 %v1239_v35  ;;  %v3396_v45 = vld [vmem:[%s5082_s3 + $0x140] sm:$0xff]   ;;  %v3398_v35 = vld [vmem:[%s5082_s3 + $0x148] sm:$0xff]  }
 0x1d4   : > { %v4211_v5 = vsel %vm959_vm15, %v3966_v59, 128  ;;  %v3399_v59 = vld [vmem:[%s5082_s3 + $0x1c0] sm:$0xff]   ;;  %3081 = vmatprep.subr.bf16.mxu0 %v3396_v45  ;;  %v3405_v45 = vld [vmem:[%s5082_s3 + $0x188] sm:$0xff]  }
 0x1d5   : > { %5134 = vst [vmem:[#allocation19_spill] sm:$0xff] %v4211_v5  ;;  %898 = vmin.xlane.f32.xlu1 %v4206_v57  ;;  %v4214_v62 = vcvt.s32.f32 %v1053_v0  ;;  %5136 = vst [vmem:[#allocation21_spill] sm:$0xff] %v4217_v28  ;;  %v1067_v6 = vshra.s32 %v4211_v5, 16  ;;  %v3397_v0 = vld [vmem:[%s5082_s3 + $0x100] sm:$0xff]   ;;  %3121 = vmatprep.subr.bf16.mxu1 %v3399_v59  ;;  %v3402_v5 = vld [vmem:[%s5082_s3 + $0x150] sm:$0xff]   ;;  %v796_v57 = vand.u32 65535, %v3994_v56 }
 0x1d6   : > { %3082 = vmatpush3.bf16.msra.mxu0 %v3397_v0  ;;  %v3404_v59 = vld [vmem:[%s5082_s3 + $0x110] sm:$0xff]   ;;  %v624_v0 = vand.u32 65535, %v3970_v48  ;;  %v982_v48 = vand.u32 65535, %v4002_v1 }
 0x1d7   : > { %5135 = vst [vmem:[#allocation20_spill] sm:$0xff] %v4214_v62  ;;  %1056 = vmin.xlane.f32.xlu0 %v4214_v62  ;;  %v4221_v38 = vcvt.s32.f32 %v1067_v6  ;;  %v3401_v6 = vld [vmem:[%s5082_s3 + $0x180] sm:$0xff]   ;;  %3083 = vmatprep.subr.bf16.mxu0 %v3398_v35  ;;  %v968_v35 = vand.u32 65535, %v3977_v16 }
 0x1d8   : > { %3122 = vmatpush3.bf16.msra.mxu1 %v3401_v6  ;;  %v626_v62 = vcvt.s32.f32 %v624_v0 }
 0x1d9   : > { %1242 = vmin.xlane.f32.xlu1 %v4217_v28  ;;  %5137 = vst [vmem:[#allocation22_spill] sm:$0xff] %v4221_v38  ;;  %v3400_v28 = vld [vmem:[%s5082_s3 + $0x108] sm:$0xff]  }
 0x1da   : > { %3084 = vmatpush3.bf16.msra.mxu0 %v3400_v28 }
 0x1db   : > { %3085 = vmatprep.subr.bf16.mxu0 %v3402_v5  ;;  %v970_v5 = vcvt.s32.f32 %v968_v35  ;;  %v984_v35 = vcvt.s32.f32 %v982_v48 }
 0x1dd   : > { %1070 = vmin.xlane.f32.xlu1 %v4221_v38  ;;  %v3403_v38 = vld [vmem:[%s5082_s3 + $0x1c8] sm:$0xff]  }
 0x1de   : > { %3123 = vmatprep.subr.bf16.mxu1 %v3403_v38  ;;  %3086 = vmatpush3.bf16.msra.mxu0 %v3404_v59  ;;  %v638_v38 = vand.u32 65535, %v3984_v50 }
 0x1df   : > { %3124 = vmatpush3.bf16.msra.mxu1 %v3405_v45 }
 0x1e0   : > { %v640_v59 = vcvt.s32.f32 %v638_v38 }
 0x228   : > { %v4256_v6 = vpop.xlane.xlu0 %628 }
 0x229   : > { %vm630_vm0 = vcmp.eq.f32.partialorder %v3974_v14, %v4256_v6  ;;  %v1140_v14 = vand.u32 65535, %v3991_v22  ;;  %v652_v22 = vand.u32 65535, %v4028_v12 }
 0x22a   : > { %v631_v28 = vsel %vm630_vm0, %v626_v62, inf  ;;  %v798_v62 = vcvt.s32.f32 %v796_v57 }
 0x22b   : > { %632 = vmin.xlane.f32.xlu0 %v631_v28  ;;  %v1142_v57 = vcvt.s32.f32 %v1140_v14 }
 0x22c   : > { %v4262_v4 = vpop.xlane.xlu0 %972 }
 0x22d   : > { %vm974_vm1 = vcmp.eq.f32.partialorder %v3987_v58, %v4262_v4  ;;  %v810_v58 = vand.u32 65535, %v4011_v29 }
 0x22e   : > { %v4267_v16 = vpop.xlane.xlu1 %642  ;;  %v975_v45 = vsel %vm974_vm1, %v970_v5, inf }
 0x22f   : > { %976 = vmin.xlane.f32.xlu0 %v975_v45  ;;  %vm644_vm2 = vcmp.eq.f32.partialorder %v3998_v23, %v4267_v16  ;;  %v812_v5 = vcvt.s32.f32 %v810_v58  ;;  %v654_v45 = vcvt.s32.f32 %v652_v22 }
 0x230   : > { %v4272_v50 = vpop.xlane.xlu0 %800  ;;  %v645_v56 = vsel %vm644_vm2, %v640_v59, inf }
 0x231   : > { %646 = vmin.xlane.f32.xlu1 %v645_v56  ;;  %vm802_vm3 = vcmp.eq.f32.partialorder %v4006_v27, %v4272_v50  ;;  %v1154_v27 = vand.u32 65535, %v4019_v44  ;;  %v3406_v44 = vld [vmem:[%s5082_s3 + $0x158] sm:$0xff]  }
 0x232   : > { %v4277_v1 = vpop.xlane.xlu1 %986  ;;  %v803_v0 = vsel %vm802_vm3, %v798_v62, inf  ;;  %v3408_v56 = vld [vmem:[%s5082_s3 + $0x118] sm:$0xff]   ;;  %3087 = vmatprep.subr.bf16.mxu0 %v3406_v44  ;;  %v824_v62 = vand.u32 65535, %v4058_v21  ;;  %v1010_v21 = vand.u32 65535, %v4051_v19 }
 0x233   : > { %804 = vmin.xlane.f32.xlu0 %v803_v0  ;;  %vm988_vm4 = vcmp.eq.f32.partialorder %v4015_v33, %v4277_v1  ;;  %v996_v33 = vand.u32 65535, %v4042_v20  ;;  %v1156_v14 = vcvt.s32.f32 %v1154_v27  ;;  %3088 = vmatpush3.bf16.msra.mxu0 %v3408_v56  ;;  %v3412_v27 = vld [vmem:[%s5082_s3 + $0x120] sm:$0xff]  }
 0x234   : > { %v4282_v23 = vpop.xlane.xlu0 %1144  ;;  %v989_v38 = vsel %vm988_vm4, %v984_v35, inf  ;;  %v3410_v35 = vld [vmem:[%s5082_s3 + $0x160] sm:$0xff]  }
 0x235   : > { %990 = vmin.xlane.f32.xlu1 %v989_v38  ;;  %vm1146_vm5 = vcmp.eq.f32.partialorder %v4023_v9, %v4282_v23  ;;  %v3407_v9 = vld [vmem:[%s5082_s3 + $0x1d0] sm:$0xff]   ;;  %v998_v0 = vcvt.s32.f32 %v996_v33  ;;  %3089 = vmatprep.subr.bf16.mxu0 %v3410_v35  ;;  %v826_v33 = vcvt.s32.f32 %v824_v62 }
 0x236   : > { %v4287_v29 = vpop.xlane.xlu1 %814  ;;  %v1147_v28 = vsel %vm1146_vm5, %v1142_v57, inf  ;;  %3125 = vmatprep.subr.bf16.mxu1 %v3407_v9  ;;  %v1012_v9 = vcvt.s32.f32 %v1010_v21  ;;  %v3420_v35 = vld [vmem:[%s5082_s3 + $0x130] sm:$0xff]  }
 0x237   : > { %1148 = vmin.xlane.f32.xlu0 %v1147_v28  ;;  %vm816_vm6 = vcmp.eq.f32.partialorder %v4025_v10, %v4287_v29  ;;  %v666_v10 = vand.u32 65535, %v4035_v13  ;;  %v1168_v28 = vand.u32 65535, %v4074_v30  ;;  %3090 = vmatpush3.bf16.msra.mxu0 %v3412_v27  ;;  %v838_v30 = vand.u32 65535, %v4067_v26 }
 0x238   : > { %v4292_v12 = vpop.xlane.xlu0 %656  ;;  %v817_v48 = vsel %vm816_vm6, %v812_v5, inf }
 0x239   : > { %818 = vmin.xlane.f32.xlu1 %v817_v48  ;;  %vm658_vm7 = vcmp.eq.f32.partialorder %v4039_v18, %v4292_v12  ;;  %v3409_v18 = vld [vmem:[%s5082_s3 + $0x190] sm:$0xff]   ;;  %v668_v57 = vcvt.s32.f32 %v666_v10  ;;  %v3414_v48 = vld [vmem:[%s5082_s3 + $0x168] sm:$0xff]   ;;  %v1170_v56 = vcvt.s32.f32 %v1168_v28 }
 0x23a   : > { %v4303_v59 = vpop.xlane.xlu1 %1158  ;;  %v659_v20 = vsel %vm658_vm7, %v654_v45, inf  ;;  %3126 = vmatpush3.bf16.msra.mxu1 %v3409_v18  ;;  %v3416_v10 = vld [vmem:[%s5082_s3 + $0x128] sm:$0xff]   ;;  %3091 = vmatprep.subr.bf16.mxu0 %v3414_v48  ;;  %v3418_v18 = vld [vmem:[%s5082_s3 + $0x170] sm:$0xff]  }
 0x23b   : > { %660 = vmin.xlane.f32.xlu0 %v659_v20  ;;  %vm1160_vm8 = vcmp.eq.f32.partialorder %v4046_v60, %v4303_v59  ;;  %v3411_v60 = vld [vmem:[%s5082_s3 + $0x1d8] sm:$0xff]   ;;  %v680_v20 = vand.u32 65535, %v4090_v46  ;;  %3092 = vmatpush3.bf16.msra.mxu0 %v3416_v10  ;;  %v1182_v46 = vand.u32 65535, %v4083_v32 }
 0x23c   : > { %v4314_v13 = vpop.xlane.xlu0 %1000  ;;  %v1161_v58 = vsel %vm1160_vm8, %v1156_v14, inf  ;;  %3127 = vmatprep.subr.bf16.mxu1 %v3411_v60  ;;  %3093 = vmatprep.subr.bf16.mxu0 %v3418_v18  ;;  %v1024_v60 = vand.u32 65535, %v4106_v49  ;;  %v694_v49 = vand.u32 65535, %v4099_v7  ;;  %v3427_v10 = vld [vmem:[%s5082_s3 + $0x1b8] sm:$0xff]  }
 0x23d   : > { %1162 = vmin.xlane.f32.xlu1 %v1161_v58  ;;  %vm1002_vm9 = vcmp.eq.f32.partialorder %v4055_v2, %v4314_v13  ;;  %v3413_v2 = vld [vmem:[%s5082_s3 + $0x198] sm:$0xff]   ;;  %v1184_v28 = vcvt.s32.f32 %v1182_v46 }
 0x23e   : > { %v4325_v22 = vpop.xlane.xlu1 %670  ;;  %v1003_v38 = vsel %vm1002_vm9, %v998_v0, inf  ;;  %3128 = vmatpush3.bf16.msra.mxu1 %v3413_v2  ;;  %v840_v0 = vcvt.s32.f32 %v838_v30  ;;  %v3426_v30 = vld [vmem:[%s5082_s3 + $0x1f8] sm:$0xff]  }
 0x23f   : > { %1004 = vmin.xlane.f32.xlu0 %v1003_v38  ;;  %vm672_vm10 = vcmp.eq.f32.partialorder %v4062_v8, %v4325_v22  ;;  %v3415_v8 = vld [vmem:[%s5082_s3 + $0x1e0] sm:$0xff]   ;;  %v682_v38 = vcvt.s32.f32 %v680_v20  ;;  %3094 = vmatpush3.bf16.msra.mxu0 %v3420_v35 }
 0x240   : > { %v4336_v19 = vpop.xlane.xlu0 %828  ;;  %v673_v5 = vsel %vm672_vm10, %v668_v57, inf  ;;  %3129 = vmatprep.subr.bf16.mxu1 %v3415_v8  ;;  %v3422_v57 = vld [vmem:[%s5082_s3 + $0x178] sm:$0xff]   ;;  %v1026_v8 = vcvt.s32.f32 %v1024_v60 }
 0x241   : > { %674 = vmin.xlane.f32.xlu1 %v673_v5  ;;  %vm830_vm11 = vcmp.eq.f32.partialorder %v4071_v17, %v4336_v19  ;;  %v3417_v17 = vld [vmem:[%s5082_s3 + $0x1a0] sm:$0xff]   ;;  %v3424_v5 = vld [vmem:[%s5082_s3 + $0x138] sm:$0xff]   ;;  %3095 = vmatprep.subr.bf16.mxu0 %v3422_v57 }
 0x242   : > { %v4347_v45 = vpop.xlane.xlu1 %1014  ;;  %v831_v44 = vsel %vm830_vm11, %v826_v33, inf  ;;  %3130 = vmatpush3.bf16.msra.mxu1 %v3417_v17  ;;  %v852_v33 = vand.u32 65535, %v4122_v53 }
 0x243   : > { %832 = vmin.xlane.f32.xlu0 %v831_v44  ;;  %vm1016_vm12 = vcmp.eq.f32.partialorder %v4078_v15, %v4347_v45  ;;  %v3419_v15 = vld [vmem:[%s5082_s3 + $0x1e8] sm:$0xff]   ;;  %3096 = vmatpush3.bf16.msra.mxu0 %v3424_v5 }
 0x244   : > { %v4358_v26 = vpop.xlane.xlu0 %1172  ;;  %v1017_v14 = vsel %vm1016_vm12, %v1012_v9, inf  ;;  %3131 = vmatprep.subr.bf16.mxu1 %v3419_v15  ;;  %v696_v9 = vcvt.s32.f32 %v694_v49 }
 0x245   : > { %1018 = vmin.xlane.f32.xlu1 %v1017_v14  ;;  %vm1174_vm13 = vcmp.eq.f32.partialorder %v4087_v31, %v4358_v26  ;;  %v3421_v31 = vld [vmem:[%s5082_s3 + $0x1a8] sm:$0xff]   ;;  %v854_v14 = vcvt.s32.f32 %v852_v33 }
 0x246   : > { %v4369_v62 = vpop.xlane.xlu1 %842  ;;  %v1175_v58 = vsel %vm1174_vm13, %v1170_v56, inf  ;;  %3132 = vmatpush3.bf16.msra.mxu1 %v3421_v31  ;;  %v5142_v33 = vld [vmem:[#allocation15_spill] sm:$0xff] }
 0x247   : > { %1176 = vmin.xlane.f32.xlu0 %v1175_v58  ;;  %vm844_vm14 = vcmp.eq.f32.partialorder %v4094_v11, %v4369_v62  ;;  %v3423_v11 = vld [vmem:[%s5082_s3 + $0x1f0] sm:$0xff]  }
 0x248   : > { %v4380_v32 = vpop.xlane.xlu0 %684  ;;  %v845_v21 = vsel %vm844_vm14, %v840_v0, inf  ;;  %3133 = vmatprep.subr.bf16.mxu1 %v3423_v11 }
 0x249   : > { %846 = vmin.xlane.f32.xlu1 %v845_v21  ;;  %vm686_vm15 = vcmp.eq.f32.partialorder %v4103_v24, %v4380_v32  ;;  %v3425_v24 = vld [vmem:[%s5082_s3 + $0x1b0] sm:$0xff]  }
 0x24a   : > { %v4391_v27 = vpop.xlane.xlu1 %1186  ;;  %v687_v2 = vsel %vm686_vm15, %v682_v38, inf  ;;  %3134 = vmatpush3.bf16.msra.mxu1 %v3425_v24  ;;  %v5139_v38 = vld [vmem:[#allocation14_spill] sm:$0xff]  ;;  %v5141_v24 = vld [vmem:[#allocation16_spill] sm:$0xff] }
 0x24b   : > { %688 = vmin.xlane.f32.xlu0 %v687_v2  ;;  %vm1188_vm0 = vcmp.eq.f32.partialorder %v4110_v25, %v4391_v27  ;;  %v1038_v25 = vand.u32 65535, %v4115_v51  ;;  %3135 = vmatprep.subr.bf16.mxu1 %v3426_v30  ;;  %v866_v51 = vand.u32 65535, %v4131_v54 }
 0x24c   : > { %v4402_v7 = vpop.xlane.xlu0 %1028  ;;  %v1189_v48 = vsel %vm1188_vm0, %v1184_v28, inf }
 0x24d   : > { %1190 = vmin.xlane.f32.xlu1 %v1189_v48  ;;  %vm1030_vm1 = vcmp.eq.f32.partialorder %v4119_v52, %v4402_v7  ;;  %v1196_v52 = vand.u32 65535, %v4138_v55  ;;  %v1040_v15 = vcvt.s32.f32 %v1038_v25  ;;  %v868_v31 = vcvt.s32.f32 %v866_v51 }
 0x24e   : > { %v4410_v44 = vpop.xlane.xlu1 %698  ;;  %v1031_v53 = vsel %vm1030_vm1, %v1026_v8, inf  ;;  %3136 = vmatpush3.bf16.msra.mxu1 %v3427_v10  ;;  %v894_v48 = vand.u32 65535, %v5142_v33  ;;  %v3428_v10 = vld [vmem:[%s5082_s3 + $0x40] sm:$0xff]  }
 0x24f   : > { %1032 = vmin.xlane.f32.xlu0 %v1031_v53  ;;  %vm700_vm2 = vcmp.eq.f32.partialorder %v4126_v42, %v4410_v44  ;;  %v708_v42 = vand.u32 65535, %v4154_v61  ;;  %v1198_v58 = vcvt.s32.f32 %v1196_v52  ;;  %v5143_v52 = vld [vmem:[#allocation17_spill] sm:$0xff]  ;;  %3161 = vmatprep.subr.bf16.mxu0 %v3428_v10 }
 0x250   : > { %v4418_v17 = vpop.xlane.xlu0 %856  ;;  %v701_v20 = vsel %vm700_vm2, %v696_v9, inf }
 0x251   : > { %702 = vmin.xlane.f32.xlu1 %v701_v20  ;;  %vm858_vm3 = vcmp.eq.f32.partialorder %v4135_v43, %v4418_v17  ;;  %v5138_v43 = vld [vmem:[#allocation12_spill] sm:$0xff]  ;;  %v710_v21 = vcvt.s32.f32 %v708_v42  ;;  %v1238_v20 = vand.u32 65535, %v5143_v52 }
 0x252   : > { %v4423_v56 = vpop.xlane.xlu1 %1042  ;;  %v859_v18 = vsel %vm858_vm3, %v854_v14, inf  ;;  %v1210_v54 = vand.u32 65535, %v5138_v43 }
 0x253   : > { %860 = vmin.xlane.f32.xlu0 %v859_v18  ;;  %vm1044_vm4 = vcmp.eq.f32.partialorder %v4142_v41, %v4423_v56  ;;  %v880_v41 = vand.u32 65535, %v4170_v63 }
 0x254   : > { %v4428_v55 = vpop.xlane.xlu0 %1200  ;;  %v1045_v46 = vsel %vm1044_vm4, %v1040_v15, inf  ;;  %v1212_v2 = vcvt.s32.f32 %v1210_v54 }
 0x255   : > { %1046 = vmin.xlane.f32.xlu1 %v1045_v46  ;;  %vm1202_vm5 = vcmp.eq.f32.partialorder %v4151_v40, %v4428_v55  ;;  %v5140_v40 = vld [vmem:[#allocation13_spill] sm:$0xff]  ;;  %v882_v5 = vcvt.s32.f32 %v880_v41  ;;  %v5146_v46 = vld [vmem:[#allocation19_spill] sm:$0xff] }
 0x256   : > { %v4433_v0 = vpop.xlane.xlu1 %870  ;;  %v1203_v35 = vsel %vm1202_vm5, %v1198_v58, inf  ;;  %v722_v57 = vand.u32 65535, %v5140_v40  ;;  %v1066_v58 = vand.u32 65535, %v5146_v46  ;;  %v5148_v40 = vld [vmem:[#allocation22_spill] sm:$0xff] }
 0x257   : > { %1204 = vmin.xlane.f32.xlu0 %v1203_v35  ;;  %vm872_vm6 = vcmp.eq.f32.partialorder %v4158_v39, %v4433_v0  ;;  %v1224_v39 = vand.u32 65535, %v4186_v3  ;;  %v1240_v35 = vcvt.s32.f32 %v1238_v20  ;;  %v807_v20 = vcvt.f32.s32 %v4272_v50 }
 0x258   : > { %v4438_v61 = vpop.xlane.xlu0 %712  ;;  %v873_v60 = vsel %vm872_vm6, %v868_v31, inf  ;;  %v724_v25 = vcvt.s32.f32 %v722_v57  ;;  %v5147_v31 = vld [vmem:[#allocation21_spill] sm:$0xff]  ;;  %v1151_v50 = vcvt.f32.s32 %v4282_v23 }
 0x259   : > { %874 = vmin.xlane.f32.xlu1 %v873_v60  ;;  %vm714_vm7 = vcmp.eq.f32.partialorder %v5139_v38, %v4438_v61  ;;  %v1226_v9 = vcvt.s32.f32 %v1224_v39  ;;  %v3432_v60 = vld [vmem:[%s5082_s3 + $0xc0] sm:$0xff]   ;;  %v1068_v38 = vcvt.s32.f32 %v1066_v58  ;;  %v649_v39 = vcvt.f32.s32 %v4267_v16 }
 0x25a   : > { %v4443_v11 = vpop.xlane.xlu1 %1214  ;;  %v715_v49 = vsel %vm714_vm7, %v710_v21, inf  ;;  %3201 = vmatprep.subr.bf16.mxu1 %v3432_v60  ;;  %v821_v16 = vcvt.f32.s32 %v4287_v29  ;;  %v808_v46 = vshll.u32 %v807_v20, 16  ;;  %v1165_v29 = vcvt.f32.s32 %v4303_v59 }
 0x25b   : > { %716 = vmin.xlane.f32.xlu0 %v715_v49  ;;  %vm1216_vm8 = vcmp.eq.f32.partialorder %v4174_v37, %v4443_v11  ;;  %v1052_v37 = vand.u32 65535, %v4202_v47  ;;  %v5144_v47 = vld [vmem:[#allocation18_spill] sm:$0xff]  ;;  %v1152_v23 = vshll.u32 %v1151_v50, 16  ;;  %v677_v59 = vcvt.f32.s32 %v4325_v22  ;;  %v3430_v22 = vld [vmem:[%s5082_s3 + $0x48] sm:$0xff]  }
 0x25c   : > { %v4448_v63 = vpop.xlane.xlu0 %884  ;;  %v1217_v28 = vsel %vm1216_vm8, %v1212_v2, inf  ;;  %v635_v2 = vcvt.f32.s32 %v4256_v6 }
 0x25d   : > { %1218 = vmin.xlane.f32.xlu1 %v1217_v28  ;;  %vm886_vm9 = vcmp.eq.f32.partialorder %v5141_v24, %v4448_v63  ;;  %v1054_v42 = vcvt.s32.f32 %v1052_v37  ;;  %v650_v37 = vshll.u32 %v649_v39, 16 }
 0x25e   : > { %v4453_v8 = vpop.xlane.xlu1 %726  ;;  %v887_v30 = vsel %vm886_vm9, %v882_v5, inf  ;;  %v979_v5 = vcvt.f32.s32 %v4262_v4  ;;  %v636_v33 = vshll.u32 %v635_v2, 16  ;;  %v5149_v4 = vld [vmem:[#allocation11_spill] sm:$0xff]  ;;  %v1166_v2 = vshll.u32 %v1165_v29, 16 }
 0x25f   : > { %888 = vmin.xlane.f32.xlu0 %v887_v30  ;;  %vm728_vm10 = vcmp.eq.f32.partialorder %v4190_v36, %v4453_v8  ;;  %v896_v36 = vcvt.s32.f32 %v894_v48  ;;  %v993_v48 = vcvt.f32.s32 %v4277_v1 }
 0x260   : > { %v4458_v3 = vpop.xlane.xlu0 %1228  ;;  %v729_v53 = vsel %vm728_vm10, %v724_v25, inf  ;;  %v980_v10 = vshll.u32 %v979_v5, 16 }
 0x261   : > { %730 = vmin.xlane.f32.xlu1 %v729_v53  ;;  %vm1230_vm11 = vcmp.eq.f32.partialorder %v4199_v34, %v4458_v3  ;;  %v5145_v34 = vld [vmem:[#allocation20_spill] sm:$0xff]  ;;  %v994_v6 = vshll.u32 %v993_v48, 16 }
 0x262   : > { %v4466_v14 = vpop.xlane.xlu1 %898  ;;  %v1231_v51 = vsel %vm1230_vm11, %v1226_v9, inf }
 0x263   : > { %1232 = vmin.xlane.f32.xlu0 %v1231_v51  ;;  %vm900_vm12 = vcmp.eq.f32.partialorder %v5144_v47, %v4466_v14 }
 0x264   : > { %v4470_v18 = vpop.xlane.xlu0 %1056  ;;  %v901_v15 = vsel %vm900_vm12, %v896_v36, inf }
 0x265   : > { %902 = vmin.xlane.f32.xlu1 %v901_v15  ;;  %vm1058_vm13 = vcmp.eq.f32.partialorder %v5145_v34, %v4470_v18 }
 0x266   : > { %v4475_v43 = vpop.xlane.xlu1 %1242  ;;  %v1059_v54 = vsel %vm1058_vm13, %v1054_v42, inf }
 0x267   : > { %1060 = vmin.xlane.f32.xlu0 %v1059_v54  ;;  %vm1244_vm14 = vcmp.eq.f32.partialorder %v5147_v31, %v4475_v43  ;;  %v822_v54 = vshll.u32 %v821_v16, 16 }
 0x268   : > { %v1245_v41 = vsel %vm1244_vm14, %v1240_v35, inf }
 0x269   : > { %1246 = vmin.xlane.f32.xlu1 %v1245_v41 }
 0x26a   : > { %v4482_v21 = vpop.xlane.xlu1 %1070 }
 0x26b   : > { %vm1072_vm15 = vcmp.eq.f32.partialorder %v5148_v40, %v4482_v21 }
 0x26c   : > { %v1073_v57 = vsel %vm1072_vm15, %v1068_v38, inf  ;;  %v663_v38 = vcvt.f32.s32 %v4292_v12  ;;  %v3429_v12 = vld [vmem:[%s5082_s3] sm:$0xff]  }
 0x26d   : > { %1074 = vmin.xlane.f32.xlu1 %v1073_v57 }
 0x2b8   : > { %v633_v49 = vpop.xlane.xlu0 %632 }
 0x2b9   : > { %v634_v28 = vcvt.f32.s32 %v633_v49 }
 0x2bb   : > { %v637_v53 = vadd.s32 %v636_v33, %v634_v28  ;;  %v664_v33 = vshll.u32 %v663_v38, 16 }
 0x2bc   : > { %v977_v24 = vpop.xlane.xlu0 %976 }
 0x2bd   : > { %v978_v30 = vcvt.f32.s32 %v977_v24  ;;  %vm736_vm0 = vcmp.eq.s32.totalorder %v5149_v4, %v637_v53  ;;  %v3501_v53 = vmov 1.0|1.0  }
 0x2be   : > { %v647_v25 = vpop.xlane.xlu1 %646 }
 0x2bf   : > { %v648_v9 = vcvt.f32.s32 %v647_v25  ;;  %v981_v36 = vadd.s32 %v980_v10, %v978_v30  ;;  %v5154_v30 = vmov 0  ;;  %v1007_v25 = vcvt.f32.s32 %v4314_v13  ;;  %v3431_v13 = vld [vmem:[%s5082_s3 + $0x8] sm:$0xff]  }
 0x2c0   : > { %v805_v52 = vpop.xlane.xlu0 %804  ;;  %v1021_v10 = vcvt.f32.s32 %v4347_v45  ;;  %v3433_v45 = vld [vmem:[%s5082_s3 + $0x80] sm:$0xff]  }
 0x2c1   : > { %v651_v51 = vadd.s32 %v650_v37, %v648_v9  ;;  %v806_v1 = vcvt.f32.s32 %v805_v52  ;;  %vm1080_vm3 = vcmp.eq.s32.totalorder %v5149_v4, %v981_v36  ;;  %v678_v9 = vshll.u32 %v677_v59, 16 }
 0x2c2   : > { %v991_v47 = vpop.xlane.xlu1 %990  ;;  %v1022_v50 = vshll.u32 %v1021_v10, 16 }
 0x2c3   : > { %vm737_vm1 = vcmp.eq.s32.totalorder %v5149_v4, %v651_v51  ;;  %v992_v15 = vcvt.f32.s32 %v991_v47  ;;  %v809_v31 = vadd.s32 %v808_v46, %v806_v1  ;;  %v3434_v47 = vld [vmem:[%s5082_s3 + $0x50] sm:$0xff]   ;;  %v3436_v1 = vld [vmem:[%s5082_s3 + $0xc8] sm:$0xff]  }
 0x2c4   : > { %vm4494_vm2 = vmpackc.low %vm737_vm1, %vm736_vm0  ;;  %v1149_v34 = vpop.xlane.xlu0 %1148 }
 0x2c5   : > { %v995_v58 = vadd.s32 %v994_v6, %v992_v15  ;;  %v1150_v41 = vcvt.f32.s32 %v1149_v34  ;;  %vm908_vm6 = vcmp.eq.s32.totalorder %v5149_v4, %v809_v31  ;;  %v1008_v15 = vshll.u32 %v1007_v25, 16  ;;  %v3442_v25 = vld [vmem:[%s5082_s3 + $0x60] sm:$0xff]  }
 0x2c6   : > { %v819_v35 = vpop.xlane.xlu1 %818  ;;  %v835_v34 = vcvt.f32.s32 %v4336_v19  ;;  %v3435_v19 = vld [vmem:[%s5082_s3 + $0x10] sm:$0xff]  }
 0x2c7   : > { %vm1081_vm4 = vcmp.eq.s32.totalorder %v5149_v4, %v995_v58  ;;  %v820_v60 = vcvt.f32.s32 %v819_v35  ;;  %v1153_v5 = vadd.s32 %v1152_v23, %v1150_v41  ;;  %v849_v58 = vcvt.f32.s32 %v4369_v62  ;;  %v3437_v62 = vld [vmem:[%s5082_s3 + $0x88] sm:$0xff]   ;;  %v3440_v23 = vld [vmem:[%s5082_s3 + $0xd0] sm:$0xff]  }
 0x2c8   : > { %vm4503_vm5 = vmpackc.low %vm1081_vm4, %vm1080_vm3  ;;  %v661_v57 = vpop.xlane.xlu0 %660  ;;  %v1179_v41 = vcvt.f32.s32 %v4358_v26  ;;  %v1193_v26 = vcvt.f32.s32 %v4391_v27 }
 0x2c9   : > { %v823_v49 = vadd.s32 %v822_v54, %v820_v60  ;;  %v662_v39 = vcvt.f32.s32 %v661_v57  ;;  %vm1252_vm9 = vcmp.eq.s32.totalorder %v5149_v4, %v1153_v5  ;;  %v3438_v57 = vld [vmem:[%s5082_s3 + $0x58] sm:$0xff]   ;;  %v850_v59 = vshll.u32 %v849_v58, 16 }
 0x2ca   : > { %v1163_v28 = vpop.xlane.xlu1 %1162 }
 0x2cb   : > { %v1164_v24 = vcvt.f32.s32 %v1163_v28  ;;  %vm909_vm7 = vcmp.eq.s32.totalorder %v5149_v4, %v823_v49  ;;  %v665_v52 = vadd.s32 %v664_v33, %v662_v39  ;;  %v836_v49 = vshll.u32 %v835_v34, 16  ;;  %v3441_v33 = vld [vmem:[%s5082_s3 + $0x90] sm:$0xff]  }
 0x2cc   : > { %v1005_v48 = vpop.xlane.xlu0 %1004  ;;  %vm4513_vm8 = vmpackc.low %vm909_vm7, %vm908_vm6 }
 0x2cd   : > { %v5155_v30 = vsel %vm4513_vm8, 4294967295, %v5154_v30  ;;  %v1167_v37 = vadd.s32 %v1166_v2, %v1164_v24  ;;  %2845 = vmatprep.mubr.msk.bf16.mxu0 %vm4513_vm8, %v3501_v53  ;;  %v1006_v51 = vcvt.f32.s32 %v1005_v48  ;;  %vm738_vm12 = vcmp.eq.s32.totalorder %v5149_v4, %v665_v52 }
 0x2ce   : > { %2847 = vmatmul.mubr.msk.bf16.vlgmr.msra.gmra.mrb[16].mxu0 %vm4494_vm2, %v3501_v53  ;;  %v675_v20 = vpop.xlane.xlu1 %674  ;;  %v1180_v48 = vshll.u32 %v1179_v41, 16  ;;  %v1194_v52 = vshll.u32 %v1193_v26, 16 }
 0x2cf   : > { %v676_v6 = vcvt.f32.s32 %v675_v20  ;;  %vm1253_vm10 = vcmp.eq.s32.totalorder %v5149_v4, %v1167_v37  ;;  %3162 = vmatpush3.bf16.msra.mxu0 %v3429_v12  ;;  %v1009_v29 = vadd.s32 %v1008_v15, %v1006_v51  ;;  %v3439_v12 = vld [vmem:[%s5082_s3 + $0x18] sm:$0xff]   ;;  %v705_v20 = vcvt.f32.s32 %v4410_v44  ;;  %v3448_v15 = vld [vmem:[%s5082_s3 + $0xe0] sm:$0xff]  }
 0x2d0   : > { %v833_v16 = vpop.xlane.xlu0 %832  ;;  %vm4536_vm11 = vmpackc.low %vm1253_vm10, %vm1252_vm9  ;;  %3163 = vmatprep.subr.bf16.mxu0 %v3430_v22  ;;  %v3444_v37 = vld [vmem:[%s5082_s3 + $0xd8] sm:$0xff]  }
 0x2d1   : > { %v679_v46 = vadd.s32 %v678_v9, %v676_v6  ;;  %2861 = vmatprep.mubr.msk.bf16.mxu1 %vm4536_vm11, %v3501_v53  ;;  %v834_v35 = vcvt.f32.s32 %v833_v16  ;;  %vm1082_vm15 = vcmp.eq.s32.totalorder %v5149_v4, %v1009_v29  ;;  %v691_v9 = vcvt.f32.s32 %v4380_v32  ;;  %v3443_v16 = vld [vmem:[%s5082_s3 + $0x20] sm:$0xff]   ;;  %v3445_v32 = vld [vmem:[%s5082_s3 + $0x98] sm:$0xff]  }
 0x2d2   : > { %2863 = vmatmul.mubr.msk.bf16.vlgmr.msra.gmra.mrb[16].mxu1 %vm4503_vm5, %v3501_v53  ;;  %v1019_v54 = vpop.xlane.xlu1 %1018  ;;  %v706_v58 = vshll.u32 %v705_v20, 16 }
 0x2d3   : > { %v1020_v31 = vcvt.f32.s32 %v1019_v54  ;;  %vm739_vm13 = vcmp.eq.s32.totalorder %v5149_v4, %v679_v46  ;;  %3164 = vmatpush3.bf16.msra.mxu0 %v3431_v13  ;;  %3202 = vmatpush3.bf16.msra.mxu1 %v3433_v45  ;;  %v837_v5 = vadd.s32 %v836_v49, %v834_v35  ;;  %v692_v34 = vshll.u32 %v691_v9, 16 }
 0x2d4   : > { %v1177_v60 = vpop.xlane.xlu0 %1176  ;;  %vm4563_vm14 = vmpackc.low %vm739_vm13, %vm738_vm12  ;;  %3165 = vmatprep.subr.bf16.mxu0 %v3434_v47  ;;  %3203 = vmatprep.subr.bf16.mxu1 %v3436_v1  ;;  %v3446_v1 = vld [vmem:[%s5082_s3 + $0x68] sm:$0xff]   ;;  %v1035_v46 = vcvt.f32.s32 %v4402_v7  ;;  %v1049_v54 = vcvt.f32.s32 %v4423_v56  ;;  %v3449_v56 = vld [vmem:[%s5082_s3 + $0xa0] sm:$0xff]  }
 0x2d5   : > { %v1023_v2 = vadd.s32 %v1022_v50, %v1020_v31  ;;  %v1178_v39 = vcvt.f32.s32 %v1177_v60  ;;  %vm910_vm3 = vcmp.eq.s32.totalorder %v5149_v4, %v837_v5  ;;  %v3447_v7 = vld [vmem:[%s5082_s3 + $0x28] sm:$0xff]  }
 0x2d6   : > { %v847_v28 = vpop.xlane.xlu1 %846  ;;  %v1036_v49 = vshll.u32 %v1035_v46, 16 }
 0x2d7   : > { %v848_v24 = vcvt.f32.s32 %v847_v28  ;;  %vm1083_vm0 = vcmp.eq.s32.totalorder %v5149_v4, %v1023_v2  ;;  %3166 = vmatpush3.bf16.msra.mxu0 %v3435_v19  ;;  %3204 = vmatpush3.bf16.msra.mxu1 %v3437_v62  ;;  %v1181_v51 = vadd.s32 %v1180_v48, %v1178_v39  ;;  %v863_v62 = vcvt.f32.s32 %v4418_v17 }
 0x2d8   : > { %v689_v27 = vpop.xlane.xlu0 %688  ;;  %vm4582_vm1 = vmpackc.low %vm1083_vm0, %vm1082_vm15  ;;  %3167 = vmatprep.subr.bf16.mxu0 %v3438_v57  ;;  %3205 = vmatprep.subr.bf16.mxu1 %v3440_v23  ;;  %v3450_v57 = vld [vmem:[%s5082_s3 + $0x70] sm:$0xff]   ;;  %v3452_v23 = vld [vmem:[%s5082_s3 + $0xe8] sm:$0xff]   ;;  %v1050_v17 = vshll.u32 %v1049_v54, 16 }
 0x2d9   : > { %v851_v10 = vadd.s32 %v850_v59, %v848_v24  ;;  %v690_v13 = vcvt.f32.s32 %v689_v27  ;;  %vm1254_vm7 = vcmp.eq.s32.totalorder %v5149_v4, %v1181_v51  ;;  %v877_v59 = vcvt.f32.s32 %v4433_v0  ;;  %v3451_v24 = vld [vmem:[%s5082_s3 + $0x30] sm:$0xff]   ;;  %v3453_v0 = vld [vmem:[%s5082_s3 + $0xa8] sm:$0xff]   ;;  %v3454_v27 = vld [vmem:[%s5082_s3 + $0x78] sm:$0xff]  }
 0x2da   : > { %v1191_v6 = vpop.xlane.xlu1 %1190 }
 0x2db   : > { %v1192_v45 = vcvt.f32.s32 %v1191_v6  ;;  %vm911_vm4 = vcmp.eq.s32.totalorder %v5149_v4, %v851_v10  ;;  %3168 = vmatpush3.bf16.msra.mxu0 %v3439_v12  ;;  %3206 = vmatpush3.bf16.msra.mxu1 %v3441_v33  ;;  %v693_v35 = vadd.s32 %v692_v34, %v690_v13  ;;  %v864_v12 = vshll.u32 %v863_v62, 16 }
 0x2dc   : > { %v1033_v47 = vpop.xlane.xlu0 %1032  ;;  %vm4602_vm6 = vmpackc.low %vm911_vm4, %vm910_vm3  ;;  %3169 = vmatprep.subr.bf16.mxu0 %v3442_v25  ;;  %3207 = vmatprep.subr.bf16.mxu1 %v3444_v37  ;;  %v3456_v25 = vld [vmem:[%s5082_s3 + $0xf0] sm:$0xff]   ;;  %v1207_v37 = vcvt.f32.s32 %v4428_v55  ;;  %v878_v10 = vshll.u32 %v877_v59, 16 }
 0x2dd   : > { %v1195_v50 = vadd.s32 %v1194_v52, %v1192_v45  ;;  %2849 = vmatprep.mubr.msk.bf16.mxu0 %vm4602_vm6, %v3501_v53  ;;  %v1034_v31 = vcvt.f32.s32 %v1033_v47  ;;  %vm740_vm12 = vcmp.eq.s32.totalorder %v5149_v4, %v693_v35  ;;  %v1221_v52 = vcvt.f32.s32 %v4443_v11  ;;  %v3455_v45 = vld [vmem:[%s5082_s3 + $0x38] sm:$0xff]   ;;  %v3457_v55 = vld [vmem:[%s5082_s3 + $0xb0] sm:$0xff]  }
 0x2de   : > { %2851 = vmatmul.mubr.msk.bf16.gmra.mrb[20].mxu0 %vm4563_vm14, %v3501_v53  ;;  %v703_v29 = vpop.xlane.xlu1 %702  ;;  %v5168_v11 = vmov 0  ;;  %v3460_v47 = vld [vmem:[%s5082_s3 + $0xf8] sm:$0xff]  }
 0x2df   : > { %v704_v19 = vcvt.f32.s32 %v703_v29  ;;  %vm1255_vm9 = vcmp.eq.s32.totalorder %v5149_v4, %v1195_v50  ;;  %3170 = vmatpush3.bf16.msra.mxu0 %v3443_v16  ;;  %3208 = vmatpush3.bf16.msra.mxu1 %v3445_v32  ;;  %v1037_v28 = vadd.s32 %v1036_v49, %v1034_v31  ;;  %v3458_v32 = vld [vmem:[%s5082_s3 + $0x240] sm:$0xff]   ;;  %v1222_v46 = vshll.u32 %v1221_v52, 16  ;;  %v3461_v31 = vld [vmem:[%s5082_s3 + $0xb8] sm:$0xff]  }
 0x2e0   : > { %v861_v41 = vpop.xlane.xlu0 %860  ;;  %vm4629_vm10 = vmpackc.low %vm1255_vm9, %vm1254_vm7  ;;  %3171 = vmatprep.subr.bf16.mxu0 %v3446_v1  ;;  %3209 = vmatprep.subr.bf16.mxu1 %v3448_v15  ;;  %v1208_v1 = vshll.u32 %v1207_v37, 16  ;;  %v719_v15 = vcvt.f32.s32 %v4438_v61  ;;  %v733_v50 = vcvt.f32.s32 %v4453_v8  ;;  %v891_v61 = vcvt.f32.s32 %v4448_v63  ;;  %v3464_v8 = vld [vmem:[%s5082_s3 + $0x2c0] sm:$0xff]  }
 0x2e1   : > { %v707_v2 = vadd.s32 %v706_v58, %v704_v19  ;;  %2865 = vmatprep.mubr.msk.bf16.mxu1 %vm4629_vm10, %v3501_v53  ;;  %v862_v26 = vcvt.f32.s32 %v861_v41  ;;  %vm1084_vm0 = vcmp.eq.s32.totalorder %v5149_v4, %v1037_v28  ;;  %v905_v63 = vcvt.f32.s32 %v4466_v14 }
 0x2e2   : > { %2867 = vmatmul.mubr.msk.bf16.gmra.mrb[20].mxu1 %vm4582_vm1, %v3501_v53  ;;  %v1047_v39 = vpop.xlane.xlu1 %1046  ;;  %v734_v41 = vshll.u32 %v733_v50, 16  ;;  %v1235_v14 = vcvt.f32.s32 %v4458_v3  ;;  %v3466_v50 = vld [vmem:[%s5082_s3 + $0x250] sm:$0xff]  }
 0x2e3   : > { %v1048_v5 = vcvt.f32.s32 %v1047_v39  ;;  %vm741_vm13 = vcmp.eq.s32.totalorder %v5149_v4, %v707_v2  ;;  %3172 = vmatpush3.bf16.msra.mxu0 %v3447_v7  ;;  %3210 = vmatpush3.bf16.msra.mxu1 %v3449_v56  ;;  %v865_v20 = vadd.s32 %v864_v12, %v862_v26  ;;  %v720_v56 = vshll.u32 %v719_v15, 16  ;;  %v3459_v15 = vld [vmem:[%s5082_s3 + $0x200] sm:$0xff]  }
 0x2e4   : > { %v1205_v33 = vpop.xlane.xlu0 %1204  ;;  %vm4654_vm15 = vmpackc.low %vm741_vm13, %vm740_vm12  ;;  %3173 = vmatprep.subr.bf16.mxu0 %v3450_v57  ;;  %3211 = vmatprep.subr.bf16.mxu1 %v3452_v23  ;;  %v5172_v26 = vmov 0  ;;  %v906_v28 = vshll.u32 %v905_v63, 16  ;;  %v3478_v63 = vld [vmem:[%s5082_s3 + $0x268] sm:$0xff]  }
 0x2e5   : > { %v1051_v9 = vadd.s32 %v1050_v17, %v1048_v5  ;;  %v1206_v6 = vcvt.f32.s32 %v1205_v33  ;;  %vm912_vm7 = vcmp.eq.s32.totalorder %v5149_v4, %v865_v20  ;;  %v892_v17 = vshll.u32 %v891_v61, 16  ;;  %v3472_v61 = vld [vmem:[%s5082_s3 + $0x2d0] sm:$0xff]  }
 0x2e6   : > { %v875_v51 = vpop.xlane.xlu1 %874  ;;  %v1249_v5 = vcvt.f32.s32 %v4475_v43  ;;  %v1063_v43 = vcvt.f32.s32 %v4470_v18 }
 0x2e7   : > { %v876_v13 = vcvt.f32.s32 %v875_v51  ;;  %vm1085_vm3 = vcmp.eq.s32.totalorder %v5149_v4, %v1051_v9  ;;  %3174 = vmatpush3.bf16.msra.mxu0 %v3451_v24  ;;  %3212 = vmatpush3.bf16.msra.mxu1 %v3453_v0  ;;  %v1209_v54 = vadd.s32 %v1208_v1, %v1206_v6 }
 0x2e8   : > { %v717_v16 = vpop.xlane.xlu0 %716  ;;  %vm4674_vm4 = vmpackc.low %vm1085_vm3, %vm1084_vm0  ;;  %3175 = vmatprep.subr.bf16.mxu0 %v3454_v27  ;;  %3213 = vmatprep.subr.bf16.mxu1 %v3456_v25  ;;  %v5174_v27 = vmov 0  ;;  %v1236_v25 = vshll.u32 %v1235_v14, 16  ;;  %v1250_v9 = vshll.u32 %v1249_v5, 16  ;;  %v3484_v14 = vld [vmem:[%s5082_s3 + $0x2e8] sm:$0xff]   ;;  %v3488_v5 = vld [vmem:[%s5082_s3 + $0x2f0] sm:$0xff]  }
 0x2e9   : > { %v5169_v11 = vsel %vm4674_vm4, 4294967295, %v5168_v11  ;;  %v879_v34 = vadd.s32 %v878_v10, %v876_v13  ;;  %v718_v29 = vcvt.f32.s32 %v717_v16  ;;  %vm1256_vm13 = vcmp.eq.s32.totalorder %v5149_v4, %v1209_v54  ;;  %v3467_v54 = vld [vmem:[%s5082_s3 + $0x210] sm:$0xff]  }
 0x2ea   : > { %v1219_v58 = vpop.xlane.xlu1 %1218  ;;  %v1077_v10 = vcvt.f32.s32 %v4482_v21 }
 0x2eb   : > { %v1220_v35 = vcvt.f32.s32 %v1219_v58  ;;  %vm913_vm9 = vcmp.eq.s32.totalorder %v5149_v4, %v879_v34  ;;  %3176 = vmatpush3.bf16.msra.mxu0 %v3455_v45  ;;  %3214 = vmatpush3.bf16.msra.mxu1 %v3457_v55  ;;  %v721_v49 = vadd.s32 %v720_v56, %v718_v29  ;;  %v1064_v45 = vshll.u32 %v1063_v43, 16  ;;  %v3465_v58 = vld [vmem:[%s5082_s3 + $0x280] sm:$0xff]   ;;  %v3468_v29 = vld [vmem:[%s5082_s3 + $0x2c8] sm:$0xff]   ;;  %v3473_v56 = vld [vmem:[%s5082_s3 + $0x290] sm:$0xff]  }
 0x2ec   : > { %v889_v19 = vpop.xlane.xlu0 %888  ;;  %vm4692_vm12 = vmpackc.low %vm913_vm9, %vm912_vm7  ;;  %3241 = vmatprep.subr.bf16.mxu0 %v3458_v32  ;;  %3215 = vmatprep.subr.bf16.mxu1 %v3460_v47  ;;  %v1078_v18 = vshll.u32 %v1077_v10, 16 }
 0x2ed   : > { %v1223_v62 = vadd.s32 %v1222_v46, %v1220_v35  ;;  %2853 = vmatprep.mubr.msk.bf16.mxu0 %vm4692_vm12, %v3501_v53  ;;  %v890_v57 = vcvt.f32.s32 %v889_v19  ;;  %vm742_vm7 = vcmp.eq.s32.totalorder %v5149_v4, %v721_v49  ;;  %v3462_v46 = vld [vmem:[%s5082_s3 + $0x248] sm:$0xff]   ;;  %v3470_v35 = vld [vmem:[%s5082_s3 + $0x258] sm:$0xff]  }
 0x2ee   : > { %2855 = vmatmul.mubr.msk.bf16.gmra.mrb[24].mxu0 %vm4654_vm15, %v3501_v53  ;;  %v731_v23 = vpop.xlane.xlu1 %730  ;;  %v3471_v19 = vld [vmem:[%s5082_s3 + $0x218] sm:$0xff]   ;;  %v3479_v49 = vld [vmem:[%s5082_s3 + $0x228] sm:$0xff]  }
 0x2ef   : > { %v732_v2 = vcvt.f32.s32 %v731_v23  ;;  %vm1257_vm0 = vcmp.eq.s32.totalorder %v5149_v4, %v1223_v62  ;;  %3216 = vmatpush3.bf16.msra.mxu1 %v3461_v31  ;;  %v893_v24 = vadd.s32 %v892_v17, %v890_v57  ;;  %v3469_v31 = vld [vmem:[%s5082_s3 + $0x288] sm:$0xff]   ;;  %v3475_v62 = vld [vmem:[%s5082_s3 + $0x220] sm:$0xff]   ;;  %v3477_v57 = vld [vmem:[%s5082_s3 + $0x298] sm:$0xff]  }
 0x2f0   : > { %v1233_v59 = vpop.xlane.xlu0 %1232  ;;  %vm4708_vm3 = vmpackc.low %vm1257_vm0, %vm1256_vm13  ;;  %3281 = vmatprep.subr.bf16.mxu1 %v3464_v8  ;;  %v3474_v8 = vld [vmem:[%s5082_s3 + $0x260] sm:$0xff]  }
 0x2f1   : > { %v5173_v26 = vsel %vm4708_vm3, 4294967295, %v5172_v26  ;;  %v735_v39 = vadd.s32 %v734_v41, %v732_v2  ;;  %2869 = vmatprep.mubr.msk.bf16.mxu1 %vm4708_vm3, %v3501_v53  ;;  %v1234_v12 = vcvt.f32.s32 %v1233_v59  ;;  %vm914_vm0 = vcmp.eq.s32.totalorder %v5149_v4, %v893_v24  ;;  %v3476_v41 = vld [vmem:[%s5082_s3 + $0x2d8] sm:$0xff]   ;;  %v3480_v23 = vld [vmem:[%s5082_s3 + $0x2e0] sm:$0xff]   ;;  %v3482_v2 = vld [vmem:[%s5082_s3 + $0x270] sm:$0xff]  }
 0x2f2   : > { %2871 = vmatmul.mubr.msk.bf16.gmra.mrb[24].mxu1 %vm4674_vm4, %v3501_v53  ;;  %v903_v0 = vpop.xlane.xlu1 %902  ;;  %v3481_v17 = vld [vmem:[%s5082_s3 + $0x2a0] sm:$0xff]   ;;  %v3483_v59 = vld [vmem:[%s5082_s3 + $0x230] sm:$0xff]   ;;  %v3487_v24 = vld [vmem:[%s5082_s3 + $0x238] sm:$0xff]  }
 0x2f3   : > { %v904_v33 = vcvt.f32.s32 %v903_v0  ;;  %vm743_vm9 = vcmp.eq.s32.totalorder %v5149_v4, %v735_v39  ;;  %v1237_v20 = vadd.s32 %v1236_v25, %v1234_v12  ;;  %v3486_v39 = vld [vmem:[%s5082_s3 + $0x278] sm:$0xff]   ;;  %v3489_v0 = vld [vmem:[%s5082_s3 + $0x2b0] sm:$0xff]  }
 0x2f4   : > { %v1061_v3 = vpop.xlane.xlu0 %1060  ;;  %vm4722_vm13 = vmpackc.low %vm743_vm9, %vm742_vm7  ;;  %v3491_v12 = vld [vmem:[%s5082_s3 + $0x2b8] sm:$0xff]  }
 0x2f5   : > { %v5175_v27 = vsel %vm4722_vm13, 4294967295, %v5174_v27  ;;  %v907_v37 = vadd.s32 %v906_v28, %v904_v33  ;;  %v1062_v51 = vcvt.f32.s32 %v1061_v3  ;;  %v3485_v28 = vld [vmem:[%s5082_s3 + $0x2a8] sm:$0xff]  }
 0x2f6   : > { %v1247_v52 = vpop.xlane.xlu1 %1246 }
 0x2f7   : > { %v1248_v6 = vcvt.f32.s32 %v1247_v52  ;;  %vm915_vm4 = vcmp.eq.s32.totalorder %v5149_v4, %v907_v37  ;;  %v1065_v16 = vadd.s32 %v1064_v45, %v1062_v51 }
 0x2f8   : > { %vm4730_vm3 = vmpackc.low %vm915_vm4, %vm914_vm0  ;;  %vm1258_vm4 = vcmp.eq.s32.totalorder %v5149_v4, %v1237_v20 }
 0x2f9   : > { %v1251_v55 = vadd.s32 %v1250_v9, %v1248_v6  ;;  %2857 = vmatprep.mubr.msk.bf16.mxu0 %vm4730_vm3, %v3501_v53  ;;  %vm1086_vm0 = vcmp.eq.s32.totalorder %v5149_v4, %v1065_v16 }
 0x2fa   : > { %2859 = vmatmul.mubr.msk.bf16.gmra.mrb[28].mxu0 %vm4722_vm13, %v3501_v53  ;;  %v1075_v21 = vpop.xlane.xlu1 %1074 }
 0x2fb   : > { %v1076_v32 = vcvt.f32.s32 %v1075_v21  ;;  %2909 = vmatprep.mubr.msk.bf16.mxu0 %vm4513_vm8, %v3501_v53  ;;  %vm1259_vm7 = vcmp.eq.s32.totalorder %v5149_v4, %v1251_v55 }
 0x2fc   : > { %vm4745_vm9 = vmpackc.low %vm1259_vm7, %vm1258_vm4  ;;  %vm5183_vm4 = vnez %v5169_v11  ;;  %vm5184_vm7 = vnez %v5175_v27 }
 0x2fd   : > { %v1079_v1 = vadd.s32 %v1078_v18, %v1076_v32  ;;  %2873 = vmatprep.mubr.msk.bf16.mxu1 %vm4745_vm9, %v3501_v53 }
 0x2ff   : > { %vm1087_vm13 = vcmp.eq.s32.totalorder %v5149_v4, %v1079_v1  ;;  %v3463_v4 = vld [vmem:[%s5082_s3 + $0x208] sm:$0xff]  }
 0x300   : > { %vm4757_vm8 = vmpackc.low %vm1087_vm13, %vm1086_vm0  ;;  %vm5182_vm13 = vnez %v5173_v26  ;;  %vm5185_vm0 = vnez %v5155_v30  ;;  %v3490_v30 = vld [vmem:[%s5082_s3 + $0x2f8] sm:$0xff]  }
 0x301   : > { %2875 = vmatmul.mubr.msk.bf16.gmra.mrb[28].mxu1 %vm4757_vm8, %v3501_v53 }
 0x302   : > { %2911 = vmatmul.mubr.msk.bf16.vlgmr.msra.gmra.mrb[32].mxu0 %vm4494_vm2, %v3501_v53  ;;  %2925 = vmatprep.mubr.msk.bf16.mxu1 %vm4536_vm11, %v3501_v53 }
 0x303   : > { %2913 = vmatprep.mubr.msk.bf16.mxu0 %vm4602_vm6, %v3501_v53  ;;  %3242 = vmatpush3.bf16.msra.mxu0 %v3459_v15 }
 0x304   : > { %3243 = vmatprep.subr.bf16.mxu0 %v3462_v46 }
 0x307   : > { %3244 = vmatpush3.bf16.msra.mxu0 %v3463_v4 }
 0x308   : > { %3245 = vmatprep.subr.bf16.mxu0 %v3466_v50 }
 0x309   : > { %2927 = vmatmul.mubr.msk.bf16.vlgmr.msra.gmra.mrb[32].mxu1 %vm4503_vm5, %v3501_v53 }
 0x30a   : > { %3282 = vmatpush3.bf16.msra.mxu1 %v3465_v58  ;;  %2915 = vmatmul.mubr.msk.bf16.gmra.mrb[36].mxu0 %vm4563_vm14, %v3501_v53 }
 0x30b   : > { %2929 = vmatprep.mubr.msk.bf16.mxu1 %vm4629_vm10, %v3501_v53  ;;  %2917 = vmatprep.mubr.msk.bf16.mxu0 %vm4692_vm12, %v3501_v53 }
 0x30c   : > { %3246 = vmatpush3.bf16.msra.mxu0 %v3467_v54  ;;  %3283 = vmatprep.subr.bf16.mxu1 %v3468_v29 }
 0x30d   : > { %3247 = vmatprep.subr.bf16.mxu0 %v3470_v35 }
 0x30e   : > { %3284 = vmatpush3.bf16.msra.mxu1 %v3469_v31 }
 0x30f   : > { %3285 = vmatprep.subr.bf16.mxu1 %v3472_v61 }
 0x310   : > { %3248 = vmatpush3.bf16.msra.mxu0 %v3471_v19 }
 0x311   : > { %2931 = vmatmul.mubr.msk.bf16.gmra.mrb[36].mxu1 %vm4582_vm1, %v3501_v53  ;;  %3249 = vmatprep.subr.bf16.mxu0 %v3474_v8 }
 0x312   : > { %3286 = vmatpush3.bf16.msra.mxu1 %v3473_v56  ;;  %2919 = vmatmul.mubr.msk.bf16.gmra.mrb[40].mxu0 %vm4654_vm15, %v3501_v53 }
 0x313   : > { %2933 = vmatprep.mubr.msk.bf16.mxu1 %vm5182_vm13, %v3501_v53  ;;  %2921 = vmatprep.mubr.msk.bf16.mxu0 %vm4730_vm3, %v3501_v53 }
 0x314   : > { %3250 = vmatpush3.bf16.msra.mxu0 %v3475_v62  ;;  %3287 = vmatprep.subr.bf16.mxu1 %v3476_v41 }
 0x315   : > { %3251 = vmatprep.subr.bf16.mxu0 %v3478_v63 }
 0x316   : > { %3288 = vmatpush3.bf16.msra.mxu1 %v3477_v57 }
 0x317   : > { %3289 = vmatprep.subr.bf16.mxu1 %v3480_v23 }
 0x318   : > { %3252 = vmatpush3.bf16.msra.mxu0 %v3479_v49 }
 0x319   : > { %2935 = vmatmul.mubr.msk.bf16.gmra.mrb[40].mxu1 %vm5183_vm4, %v3501_v53  ;;  %3253 = vmatprep.subr.bf16.mxu0 %v3482_v2 }
 0x31a   : > { %3290 = vmatpush3.bf16.msra.mxu1 %v3481_v17  ;;  %2923 = vmatmul.mubr.msk.bf16.gmra.mrb[44].mxu0 %vm5184_vm7, %v3501_v53 }
 0x31b   : > { %2937 = vmatprep.mubr.msk.bf16.mxu1 %vm4745_vm9, %v3501_v53  ;;  %3037 = vmatprep.mubr.msk.bf16.mxu0 %vm5185_vm0, %v3501_v53 }
 0x31c   : > { %3254 = vmatpush3.bf16.msra.mxu0 %v3483_v59  ;;  %3291 = vmatprep.subr.bf16.mxu1 %v3484_v14 }
 0x31d   : > { %3255 = vmatprep.subr.bf16.mxu0 %v3486_v39 }
 0x31e   : > { %3292 = vmatpush3.bf16.msra.mxu1 %v3485_v28 }
 0x31f   : > { %3293 = vmatprep.subr.bf16.mxu1 %v3488_v5 }
 0x320   : > { %3256 = vmatpush3.bf16.msra.mxu0 %v3487_v24 }
 0x321   : > { %2939 = vmatmul.mubr.msk.bf16.gmra.mrb[44].mxu1 %vm4757_vm8, %v3501_v53 }
 0x322   : > { %3294 = vmatpush3.bf16.msra.mxu1 %v3489_v0  ;;  %3053 = vmatprep.mubr.msk.bf16.mxu1 %vm4536_vm11, %v3501_v53 }
 0x323   : > { %3039 = vmatmul.mubr.msk.bf16.vlgmr.msra.gmra.mrb[48].mxu0 %vm4494_vm2, %v3501_v53  ;;  %3295 = vmatprep.subr.bf16.mxu1 %v3490_v30  ;;  %vm2507_vm2 = vcmask (!%p3069_p5), 0  }
 0x324   : > { %3041 = vmatprep.mubr.msk.bf16.mxu0 %vm4602_vm6, %v3501_v53 }
 0x326   : > { %3296 = vmatpush3.bf16.msra.mxu1 %v3491_v12 }
 0x329   : > { %3055 = vmatmul.mubr.msk.bf16.vlgmr.msra.gmra.mrb[48].mxu1 %vm4503_vm5, %v3501_v53 }
 0x32a   : > { %3057 = vmatprep.mubr.msk.bf16.mxu1 %vm4629_vm10, %v3501_v53 }
 0x32b   : > { %3043 = vmatmul.mubr.msk.bf16.gmra.mrb[52].mxu0 %vm4563_vm14, %v3501_v53 }
 0x32c   : > { %3045 = vmatprep.mubr.msk.bf16.mxu0 %vm4692_vm12, %v3501_v53 }
 0x331   : > { %3059 = vmatmul.mubr.msk.bf16.gmra.mrb[52].mxu1 %vm4582_vm1, %v3501_v53 }
 0x332   : > { %3061 = vmatprep.mubr.msk.bf16.mxu1 %vm5182_vm13, %v3501_v53 }
 0x333   : > { %3047 = vmatmul.mubr.msk.bf16.gmra.mrb[56].mxu0 %vm4654_vm15, %v3501_v53 }
 0x334   : > { %3049 = vmatprep.mubr.msk.bf16.mxu0 %vm4730_vm3, %v3501_v53 }
 0x339   : > { %3063 = vmatmul.mubr.msk.bf16.gmra.mrb[56].mxu1 %vm5183_vm4, %v3501_v53 }
 0x33a   : > { %3065 = vmatprep.mubr.msk.bf16.mxu1 %vm4745_vm9, %v3501_v53 }
 0x33b   : > { %3051 = vmatmul.mubr.msk.bf16.gmra.mrb[60].mxu0 %vm5184_vm7, %v3501_v53 }
 0x341   : > { %3067 = vmatmul.mubr.msk.bf16.gmra.mrb[60].mxu1 %vm4757_vm8, %v3501_v53 }
 0x3a1   : > { %v3097_v42 = vpop.f32.mrb[16].mxu0 }
 0x3a2   : > { %v3098_v40 = vpop.f32.mrb[17].mxu0 }
 0x3a3   : > { %v3099_v36 = vadd.f32 %v3098_v40, %v3097_v42  ;;  %v3100_v38 = vpop.f32.mrb[18].mxu0 }
 0x3a4   : > { %v3101_v22 = vpop.f32.mrb[19].mxu0 }
 0x3a5   : > { %v3102_v44 = vadd.f32 %v3101_v22, %v3100_v38  ;;  %v3137_v60 = vpop.f32.mrb[16].mxu1 }
 0x3a6   : > { %v3138_v48 = vpop.f32.mrb[17].mxu1 }
 0x3a7   : > { %v3139_v11 = vadd.f32 %v3138_v48, %v3137_v60  ;;  %v3140_v7 = vpop.f32.mrb[18].mxu1 }
 0x3a8   : > { %v3141_v26 = vpop.f32.mrb[19].mxu1 }
 0x3a9   : > { %v1701_v33 = vadd.f32 %v3139_v11, %v3099_v36  ;;  %v3142_v3 = vadd.f32 %v3141_v26, %v3140_v7 }
 0x3ab   : > { %v1704_v27 = vadd.f32 %v3142_v3, %v3102_v44 }
 0x3b1   : > { %v3103_v25 = vpop.f32.mrb[20].mxu0 }
 0x3b2   : > { %v3104_v53 = vpop.f32.mrb[21].mxu0 }
 0x3b3   : > { %v3105_v43 = vadd.f32 %v3104_v53, %v3103_v25  ;;  %v3106_v37 = vpop.f32.mrb[22].mxu0 }
 0x3b4   : > { %v3107_v9 = vpop.f32.mrb[23].mxu0 }
 0x3b5   : > { %v3108_v10 = vadd.f32 %v3107_v9, %v3106_v37  ;;  %v3143_v52 = vpop.f32.mrb[20].mxu1 }
 0x3b6   : > { %v3144_v20 = vpop.f32.mrb[21].mxu1 }
 0x3b7   : > { %v3145_v51 = vadd.f32 %v3144_v20, %v3143_v52  ;;  %v3146_v6 = vpop.f32.mrb[22].mxu1 }
 0x3b8   : > { %v3147_v13 = vpop.f32.mrb[23].mxu1 }
 0x3b9   : > { %v1709_v45 = vadd.f32 %v3145_v51, %v3105_v43  ;;  %v3148_v55 = vadd.f32 %v3147_v13, %v3146_v6 }
 0x3bb   : > { %v1712_v18 = vadd.f32 %v3148_v55, %v3108_v10 }
 0x3c1   : > { %v3109_v21 = vpop.f32.mrb[24].mxu0 }
 0x3c2   : > { %v3110_v16 = vpop.f32.mrb[25].mxu0 }
 0x3c3   : > { %v3111_v32 = vadd.f32 %v3110_v16, %v3109_v21  ;;  %v3112_v47 = vpop.f32.mrb[26].mxu0 }
 0x3c4   : > { %v3113_v1 = vpop.f32.mrb[27].mxu0 }
 0x3c5   : > { %v3114_v15 = vadd.f32 %v3113_v1, %v3112_v47  ;;  %v3149_v34 = vpop.f32.mrb[24].mxu1 }
 0x3c6   : > { %v3150_v46 = vpop.f32.mrb[25].mxu1 }
 0x3c7   : > { %v3151_v4 = vadd.f32 %v3150_v46, %v3149_v34  ;;  %v3152_v50 = vpop.f32.mrb[26].mxu1 }
 0x3c8   : > { %v3153_v58 = vpop.f32.mrb[27].mxu1 }
 0x3c9   : > { %v1717_v54 = vadd.f32 %v3151_v4, %v3111_v32  ;;  %v3154_v29 = vadd.f32 %v3153_v58, %v3152_v50 }
 0x3cb   : > { %v1720_v35 = vadd.f32 %v3154_v29, %v3114_v15 }
 0x3cd   : > { %v3115_v31 = vpop.f32.mrb[28].mxu0 }
 0x3ce   : > { %v3116_v61 = vpop.f32.mrb[29].mxu0 }
 0x3cf   : > { %v3117_v19 = vadd.f32 %v3116_v61, %v3115_v31  ;;  %v3118_v8 = vpop.f32.mrb[30].mxu0 }
 0x3d0   : > { %v3119_v56 = vpop.f32.mrb[31].mxu0 }
 0x3d1   : > { %v3120_v62 = vadd.f32 %v3119_v56, %v3118_v8 }
 0x3d4   : > { %v3155_v41 = vpop.f32.mrb[28].mxu1 }
 0x3d5   : > { %v3156_v63 = vpop.f32.mrb[29].mxu1  ;;  %v3177_v57 = vpop.f32.mrb[32].mxu0 }
 0x3d6   : > { %v3157_v23 = vadd.f32 %v3156_v63, %v3155_v41  ;;  %v3158_v49 = vpop.f32.mrb[30].mxu1  ;;  %v3178_v2 = vpop.f32.mrb[33].mxu0 }
 0x3d7   : > { %v3179_v17 = vadd.f32 %v3178_v2, %v3177_v57  ;;  %v3159_v59 = vpop.f32.mrb[31].mxu1  ;;  %v3180_v14 = vpop.f32.mrb[34].mxu0 }
 0x3d8   : > { %v1725_v39 = vadd.f32 %v3157_v23, %v3117_v19  ;;  %v3160_v28 = vadd.f32 %v3159_v59, %v3158_v49  ;;  %v3181_v5 = vpop.f32.mrb[35].mxu0 }
 0x3d9   : > { %v1958_v24 = vadd.f32 %v3179_v17, %v1701_v33  ;;  %v3182_v0 = vadd.f32 %v3181_v5, %v3180_v14 }
 0x3da   : > { %v1728_v30 = vadd.f32 %v3160_v28, %v3120_v62 }
 0x3db   : > { %v1961_v12 = vadd.f32 %v3182_v0, %v1704_v27 }
 0x3dc   : > { %v3217_v42 = vpop.f32.mrb[32].mxu1 }
 0x3dd   : > { %v3183_v40 = vpop.f32.mrb[36].mxu0  ;;  %v3218_v36 = vpop.f32.mrb[33].mxu1 }
 0x3de   : > { %v3219_v38 = vadd.f32 %v3218_v36, %v3217_v42  ;;  %v3184_v22 = vpop.f32.mrb[37].mxu0  ;;  %v3220_v44 = vpop.f32.mrb[34].mxu1 }
 0x3df   : > { %v3185_v60 = vadd.f32 %v3184_v22, %v3183_v40  ;;  %v3186_v48 = vpop.f32.mrb[38].mxu0  ;;  %v3221_v11 = vpop.f32.mrb[35].mxu1 }
 0x3e0   : > { %v4949_v7 = vadd.f32 %v3219_v38, %v1958_v24  ;;  %v3222_v26 = vadd.f32 %v3221_v11, %v3220_v44  ;;  %v3187_v3 = vpop.f32.mrb[39].mxu0 }
 0x3e1   : > { %v1966_v25 = vadd.f32 %v3185_v60, %v1709_v45  ;;  %v3188_v53 = vadd.f32 %v3187_v3, %v3186_v48 }
 0x3e2   : > { %v4951_v43 = vadd.f32 %v3222_v26, %v1961_v12 }
 0x3e3   : > { %v1969_v33 = vadd.f32 %v3188_v53, %v1712_v18 }
 0x3e4   : > { %v3223_v37 = vpop.f32.mrb[36].mxu1 }
 0x3e5   : > { %v3189_v27 = vpop.f32.mrb[40].mxu0  ;;  %v3224_v9 = vpop.f32.mrb[37].mxu1 }
 0x3e6   : > { %v3225_v10 = vadd.f32 %v3224_v9, %v3223_v37  ;;  %v3190_v52 = vpop.f32.mrb[41].mxu0  ;;  %v3226_v20 = vpop.f32.mrb[38].mxu1 }
 0x3e7   : > { %v3191_v51 = vadd.f32 %v3190_v52, %v3189_v27  ;;  %v3192_v6 = vpop.f32.mrb[42].mxu0  ;;  %v3227_v13 = vpop.f32.mrb[39].mxu1 }
 0x3e8   : > { %v4953_v55 = vadd.f32 %v3225_v10, %v1966_v25  ;;  %v3228_v21 = vadd.f32 %v3227_v13, %v3226_v20  ;;  %v3193_v16 = vpop.f32.mrb[43].mxu0 }
 0x3e9   : > { %v1974_v32 = vadd.f32 %v3191_v51, %v1717_v54  ;;  %v3194_v47 = vadd.f32 %v3193_v16, %v3192_v6 }
 0x3ea   : > { %v4955_v45 = vadd.f32 %v3228_v21, %v1969_v33 }
 0x3eb   : > { %v1977_v1 = vadd.f32 %v3194_v47, %v1720_v35 }
 0x3ec   : > { %v3229_v15 = vpop.f32.mrb[40].mxu1 }
 0x3ed   : > { %v3195_v18 = vpop.f32.mrb[44].mxu0  ;;  %v3230_v34 = vpop.f32.mrb[41].mxu1 }
 0x3ee   : > { %v3231_v46 = vadd.f32 %v3230_v34, %v3229_v15  ;;  %v3196_v4 = vpop.f32.mrb[45].mxu0  ;;  %v3232_v50 = vpop.f32.mrb[42].mxu1 }
 0x3ef   : > { %v3197_v58 = vadd.f32 %v3196_v4, %v3195_v18  ;;  %v3198_v29 = vpop.f32.mrb[46].mxu0  ;;  %v3233_v31 = vpop.f32.mrb[43].mxu1 }
 0x3f0   : > { %v4957_v61 = vadd.f32 %v3231_v46, %v1974_v32  ;;  %v3234_v19 = vadd.f32 %v3233_v31, %v3232_v50  ;;  %v3199_v8 = vpop.f32.mrb[47].mxu0 }
 0x3f1   : > { %v1982_v56 = vadd.f32 %v3197_v58, %v1725_v39  ;;  %v3200_v62 = vadd.f32 %v3199_v8, %v3198_v29 }
 0x3f2   : > { %v4959_v54 = vadd.f32 %v3234_v19, %v1977_v1 }
 0x3f3   : > { %v1985_v41 = vadd.f32 %v3200_v62, %v1728_v30 }
 0x3f4   : > { %v3235_v63 = vpop.f32.mrb[44].mxu1 }
 0x3f5   : > { %v3236_v35 = vpop.f32.mrb[45].mxu1 }
 0x3f6   : > { %v3237_v57 = vadd.f32 %v3236_v35, %v3235_v63  ;;  %v3257_v23 = vpop.f32.mrb[48].mxu0  ;;  %v3238_v49 = vpop.f32.mrb[46].mxu1 }
 0x3f7   : > { %v3258_v2 = vpop.f32.mrb[49].mxu0  ;;  %v3239_v17 = vpop.f32.mrb[47].mxu1 }
 0x3f8   : > { %v4961_v59 = vadd.f32 %v3237_v57, %v1982_v56  ;;  %v3259_v14 = vadd.f32 %v3258_v2, %v3257_v23  ;;  %v3240_v28 = vadd.f32 %v3239_v17, %v3238_v49  ;;  %v3260_v5 = vpop.f32.mrb[50].mxu0 }
 0x3f9   : > { %v3261_v24 = vpop.f32.mrb[51].mxu0 }
 0x3fa   : > { %v4963_v0 = vadd.f32 %v3240_v28, %v1985_v41  ;;  %v3262_v39 = vadd.f32 %v3261_v24, %v3260_v5  ;;  %v5187_v24 = vld [vmem:[#allocation4_spill] sm:$0xff] (!%p3069_p5) }
 0x3fc   : > { %v3297_v12 = vpop.f32.mrb[48].mxu1 }
 0x3fd   : > { %v3298_v42 = vpop.f32.mrb[49].mxu1 }
 0x3fe   : > { %v3263_v30 = vpop.f32.mrb[52].mxu0  ;;  %v3299_v40 = vadd.f32 %v3298_v42, %v3297_v12  ;;  %v3300_v36 = vpop.f32.mrb[50].mxu1  ;;  %v5188_v12 = vld [vmem:[#allocation3_spill] sm:$0xff] (!%p3069_p5)  ;;  %v5189_v42 = vld [vmem:[#allocation5_spill] sm:$0xff] (!%p3069_p5) }
 0x3ff   : > { %v3264_v38 = vpop.f32.mrb[53].mxu0  ;;  %v3301_v22 = vpop.f32.mrb[51].mxu1 }
 0x400   : > { %v2410_v44 = vadd.f32 %v3299_v40, %v3259_v14  ;;  %v3265_v60 = vadd.f32 %v3264_v38, %v3263_v30  ;;  %v3266_v48 = vpop.f32.mrb[54].mxu0  ;;  %v3302_v11 = vadd.f32 %v3301_v22, %v3300_v36  ;;  %v5190_v36 = vld [vmem:[#allocation6_spill] sm:$0xff] (!%p3069_p5) }
 0x401   : > { %v3267_v26 = vpop.f32.mrb[55].mxu0 }
 0x402   : > { %v4973_v3 = vadd.f32 %v2410_v44, %v4949_v7  ;;  %v2413_v25 = vadd.f32 %v3302_v11, %v3262_v39  ;;  %v3268_v53 = vadd.f32 %v3267_v26, %v3266_v48  ;;  %v5192_v11 = vld [vmem:[#allocation8_spill] sm:$0xff] (!%p3069_p5) }
 0x404   : > { %2448 = vst [vmem:[%s4970_s26] sm:$0xff] %v4973_v3  ;;  %v4978_v33 = vadd.f32 %v2413_v25, %v4951_v43  ;;  %v3303_v37 = vpop.f32.mrb[52].mxu1 }
 0x405   : > { %v3304_v27 = vpop.f32.mrb[53].mxu1 }
 0x406   : > { %2449 = vst [vmem:[%s4970_s26 + $0x8] sm:$0xff] %v4978_v33  ;;  %v3269_v9 = vpop.f32.mrb[56].mxu0  ;;  %v3305_v10 = vadd.f32 %v3304_v27, %v3303_v37  ;;  %v3306_v52 = vpop.f32.mrb[54].mxu1  ;;  %v5193_v37 = vld [vmem:[#allocation9_spill] sm:$0xff] (!%p3069_p5) }
 0x407   : > { %v3270_v20 = vpop.f32.mrb[57].mxu0  ;;  %v3307_v51 = vpop.f32.mrb[55].mxu1 }
 0x408   : > { %v2418_v7 = vadd.f32 %v3305_v10, %v3265_v60  ;;  %v3271_v6 = vadd.f32 %v3270_v20, %v3269_v9  ;;  %v3272_v13 = vpop.f32.mrb[58].mxu0  ;;  %v3308_v21 = vadd.f32 %v3307_v51, %v3306_v52  ;;  %v5191_v60 = vld [vmem:[#allocation7_spill] sm:$0xff] (!%p3069_p5) }
 0x409   : > { %v3273_v16 = vpop.f32.mrb[59].mxu0 }
 0x40a   : > { %v4983_v32 = vadd.f32 %v2418_v7, %v4953_v55  ;;  %v2421_v43 = vadd.f32 %v3308_v21, %v3268_v53  ;;  %v3274_v47 = vadd.f32 %v3273_v16, %v3272_v13 }
 0x40c   : > { %2450 = vst [vmem:[%s4970_s26 + $0x10] sm:$0xff] %v4983_v32  ;;  %v4988_v1 = vadd.f32 %v2421_v43, %v4955_v45  ;;  %v3309_v15 = vpop.f32.mrb[56].mxu1  ;;  %v2464_v39 = vsub.f32 (!%p3069_p5), %v4983_v32, %v5187_v24 }
 0x40d   : > { %v3310_v18 = vpop.f32.mrb[57].mxu1 }
 0x40e   : > { %2451 = vst [vmem:[%s4970_s26 + $0x18] sm:$0xff] %v4988_v1  ;;  %v3275_v34 = vpop.f32.mrb[60].mxu0  ;;  %v3311_v46 = vadd.f32 %v3310_v18, %v3309_v15  ;;  %v3312_v4 = vpop.f32.mrb[58].mxu1  ;;  %v2465_v30 = vsub.f32 (!%p3069_p5), %v4988_v1, %v5189_v42 }
 0x40f   : > { %v3276_v50 = vpop.f32.mrb[61].mxu0  ;;  %v3313_v58 = vpop.f32.mrb[59].mxu1 }
 0x410   : > { %v2426_v55 = vadd.f32 %v3311_v46, %v3271_v6  ;;  %v3277_v29 = vadd.f32 %v3276_v50, %v3275_v34  ;;  %v3278_v31 = vpop.f32.mrb[62].mxu0  ;;  %v3314_v19 = vadd.f32 %v3313_v58, %v3312_v4  ;;  %v2473_v44 = vmul.f32 (!%p3069_p5), %v2465_v30, %v2465_v30 }
 0x411   : > { %v3279_v8 = vpop.f32.mrb[63].mxu0 }
 0x412   : > { %v4993_v45 = vadd.f32 %v2426_v55, %v4957_v61  ;;  %v2429_v56 = vadd.f32 %v3314_v19, %v3274_v47  ;;  %v3280_v62 = vadd.f32 %v3279_v8, %v3278_v31 }
 0x414   : > { %2452 = vst [vmem:[%s4970_s26 + $0x20] sm:$0xff] %v4993_v45  ;;  %v4998_v41 = vadd.f32 %v2429_v56, %v4959_v54  ;;  %v3315_v63 = vpop.f32.mrb[60].mxu1  ;;  %v5186_v54 = vld [vmem:[#allocation2_spill] sm:$0xff] (!%p3069_p5)  ;;  %v2466_v38 = vsub.f32 (!%p3069_p5), %v4993_v45, %v5190_v36 }
 0x415   : > { %v3316_v35 = vpop.f32.mrb[61].mxu1  ;;  %v2462_v5 = vsub.f32 (!%p3069_p5), %v4973_v3, %v5186_v54 }
 0x416   : > { %2453 = vst [vmem:[%s4970_s26 + $0x28] sm:$0xff] %v4998_v41  ;;  %v3317_v57 = vadd.f32 %v3316_v35, %v3315_v63  ;;  %v3318_v23 = vpop.f32.mrb[62].mxu1  ;;  %v2467_v48 = vsub.f32 (!%p3069_p5), %v4998_v41, %v5191_v60  ;;  %v2474_v25 = vmul.f32 (!%p3069_p5), %v2466_v38, %v2466_v38 }
 0x417   : > { %v3319_v49 = vpop.f32.mrb[63].mxu1  ;;  %v2470_v40 = vmul.f32 (!%p3069_p5), %v2462_v5, %v2462_v5 }
 0x418   : > { %v2434_v2 = vadd.f32 %v3317_v57, %v3277_v29  ;;  %v3320_v17 = vadd.f32 %v3319_v49, %v3318_v23  ;;  %2461 = sbr.rel (%p3069_p5) target bundleno = 1223 (0x4c7), region = 40  ;;  %v2475_v53 = vmul.f32 (!%p3069_p5), %v2467_v48, %v2467_v48 }
 0x419   : > { %2478 = vadd.xlane.f32.xlu0 (!%p3069_p5), %v2470_v40 }
 0x41a   : > { %v5003_v61 = vadd.f32 %v2434_v2, %v4961_v59  ;;  %v2437_v14 = vadd.f32 %v3320_v17, %v3280_v62  ;;  %v2463_v59 = vsub.f32 (!%p3069_p5), %v4978_v33, %v5188_v12 }
 0x41c   : > { %2454 = vst [vmem:[%s4970_s26 + $0x30] sm:$0xff] %v5003_v61  ;;  %v5008_v28 = vadd.f32 %v2437_v14, %v4963_v0  ;;  %v2472_v0 = vmul.f32 (!%p3069_p5), %v2464_v39, %v2464_v39  ;;  %v2471_v22 = vmul.f32 (!%p3069_p5), %v2463_v59, %v2463_v59  ;;  %v2468_v26 = vsub.f32 (!%p3069_p5), %v5003_v61, %v5192_v11 }
 0x41e   : > { %2455 = vst [vmem:[%s4970_s26 + $0x38] sm:$0xff] %v5008_v28  ;;  %2482 = vadd.xlane.f32.xlu1 (!%p3069_p5), %v2472_v0  ;;  %2480 = vadd.xlane.f32.xlu0 (!%p3069_p5), %v2471_v22  ;;  %v2469_v27 = vsub.f32 (!%p3069_p5), %v5008_v28, %v5193_v37  ;;  %v2476_v9 = vmul.f32 (!%p3069_p5), %v2468_v26, %v2468_v26 }
 0x420   : > { %v2477_v10 = vmul.f32 %v2469_v27, %v2469_v27 }
 0x422   : > { %2484 = vadd.xlane.f32.xlu1 %v2473_v44  ;;  %2486 = vadd.xlane.f32.xlu0 %v2474_v25 }
 0x426   : > { %2488 = vadd.xlane.f32.xlu1 %v2475_v53  ;;  %2490 = vadd.xlane.f32.xlu0 %v2476_v9 }
 0x42a   : > { %2492 = vadd.xlane.f32.xlu1 %v2477_v10 }
 0x4a6   : > { %v2479_v52 = vpop.xlane.xlu0 %2478 }
 0x4ab   : > { %v2483_v20 = vpop.xlane.xlu1 %2482  ;;  %v2481_v51 = vpop.xlane.xlu0 %2480 }
 0x4ac   : > { %v2494_v6 = vadd.f32 %v2481_v51, %v2479_v52 }
 0x4ae   : > { %v2495_v13 = vadd.f32 %v2494_v6, %v2483_v20 }
 0x4af   : > { %v2485_v7 = vpop.xlane.xlu1 %2484  ;;  %v2487_v21 = vpop.xlane.xlu0 %2486 }
 0x4b0   : > { %v2496_v43 = vadd.f32 %v2495_v13, %v2485_v7 }
 0x4b2   : > { %v2497_v47 = vadd.f32 %v2496_v43, %v2487_v21 }
 0x4b3   : > { %v2489_v16 = vpop.xlane.xlu1 %2488  ;;  %v2491_v15 = vpop.xlane.xlu0 %2490 }
 0x4b4   : > { %v2498_v18 = vadd.f32 %v2497_v47, %v2489_v16 }
 0x4b6   : > { %v2499_v46 = vadd.f32 %v2498_v18, %v2491_v15 }
 0x4b7   : > { %v2493_v34 = vpop.xlane.xlu1 %2492 }
 0x4b8   : > { %v2500_v4 = vadd.f32 %v2499_v46, %v2493_v34 }
 0x4ba   : > { %v2501_v50 = vrot.slane %v2500_v4, 4 }
 0x4bc   : > { %v2502_v58 = vadd.f32 %v2501_v50, %v2500_v4 }
 0x4be   : > { %v2503_v55 = vrot.slane %v2502_v58, 2 }
 0x4c0   : > { %v2504_v29 = vadd.f32 %v2503_v55, %v2502_v58 }
 0x4c2   : > { %v2505_v31 = vrot.slane %v2504_v29, 1 }
 0x4c4   : > { %v2506_v19 = vadd.f32 %v2505_v31, %v2504_v29 }
 0x4c6   : > { %2508 = vst.msk [vmem:[%s3586_s24] sm:$0x1] %vm2507_vm2, %v2506_v19 }
 0x4c7 PF: > { %p3070_p6 = scmp.le.s32.totalorder %s4947_s21, 16384 }
 0x4c8   : > { %v5194_v8 = vld [vmem:[#allocation10_spill] sm:$0xff] (!%p3070_p6)  ;;  %v5034_v62 = vstv (!%p3070_p6), %s3068_s20  ;;  %v5196_v23 = vld [vmem:[#allocation4_spill] sm:$0xff] (!%p3070_p6)  ;;  %v5197_v14 = vld [vmem:[#allocation3_spill] sm:$0xff] (!%p3070_p6)  ;;  %v3502_v25 = vmov (!%p3070_p6), 0.0   ;;  %vm2624_vm12 = vcmask (!%p3070_p6), 0  }
 0x4c9   : > { %2512 = sbr.rel (%p3070_p6) target bundleno = 1410 (0x582), region = 44  ;;  %v2522_v56 = vmul.u32 (!%p3070_p6), 128, %v5194_v8  ;;  %v5195_v63 = vld [vmem:[#allocation2_spill] sm:$0xff] (!%p3070_p6)  ;;  %v2516_v57 = vadd.s32 (!%p3070_p6), 16, %v5194_v8  ;;  %v2573_v49 = vsub.f32 (!%p3070_p6), %v4983_v32, %v5196_v23  ;;  %v2515_v2 = vadd.s32 (!%p3070_p6), 8, %v5194_v8  ;;  %v5198_v59 = vld [vmem:[#allocation5_spill] sm:$0xff] (!%p3070_p6) }
 0x4ca   : > { %v2571_v35 = vsub.f32 (!%p3070_p6), %v4973_v3, %v5195_v63  ;;  %v2572_v54 = vsub.f32 (!%p3070_p6), %v4978_v33, %v5197_v14  ;;  %v2517_v5 = vadd.s32 (!%p3070_p6), 24, %v5194_v8  ;;  %v2518_v24 = vadd.s32 (!%p3070_p6), 32, %v5194_v8  ;;  %v5199_v30 = vld [vmem:[#allocation11_spill] sm:$0xff] (!%p3070_p6)  ;;  %v5200_v36 = vld [vmem:[#allocation6_spill] sm:$0xff] (!%p3070_p6)  ;;  %v5202_v55 = vld [vmem:[#allocation8_spill] sm:$0xff] (!%p3070_p6) }
 0x4cb   : > { %v2531_v17 = vadd.s32 (!%p3070_p6), %v5034_v62, %v2522_v56  ;;  %v2524_v39 = vmul.u32 (!%p3070_p6), 128, %v2516_v57  ;;  %v2523_v12 = vmul.u32 (!%p3070_p6), 128, %v2515_v2  ;;  %v2574_v3 = vsub.f32 (!%p3070_p6), %v4988_v1, %v5198_v59  ;;  %v5201_v11 = vld [vmem:[#allocation7_spill] sm:$0xff] (!%p3070_p6) }
 0x4cc   : > { %v2519_v42 = vadd.s32 (!%p3070_p6), 40, %v5194_v8  ;;  %v2525_v40 = vmul.u32 (!%p3070_p6), 128, %v2517_v5  ;;  %v2526_v0 = vmul.u32 (!%p3070_p6), 128, %v2518_v24  ;;  %v2575_v38 = vsub.f32 (!%p3070_p6), %v4993_v45, %v5200_v36 }
 0x4cd   : > { %v2539_v32 = vadd.s32 (!%p3070_p6), %v2531_v17, %v5199_v30  ;;  %v2533_v33 = vadd.s32 (!%p3070_p6), %v5034_v62, %v2524_v39  ;;  %v2532_v22 = vadd.s32 (!%p3070_p6), %v5034_v62, %v2523_v12  ;;  %v2520_v60 = vadd.s32 (!%p3070_p6), 48, %v5194_v8 }
 0x4ce   : > { %v2527_v44 = vmul.u32 (!%p3070_p6), 128, %v2519_v42  ;;  %v2534_v48 = vadd.s32 (!%p3070_p6), %v5034_v62, %v2525_v40  ;;  %v2535_v1 = vadd.s32 (!%p3070_p6), %v5034_v62, %v2526_v0  ;;  %v2576_v26 = vsub.f32 (!%p3070_p6), %v4998_v41, %v5201_v11 }
 0x4cf   : > { %vm2547_vm5 = vcmp.lt.s32.totalorder (!%p3070_p6), %v2539_v32, 16384  ;;  %v2541_v37 = vadd.s32 (!%p3070_p6), %v2533_v33, %v5199_v30  ;;  %v2540_v45 = vadd.s32 (!%p3070_p6), %v2532_v22, %v5199_v30  ;;  %v2528_v20 = vmul.u32 (!%p3070_p6), 128, %v2520_v60 }
 0x4d0   : > { %v3071_v53 = vsel %vm2547_vm5, 1.0, %v3502_v25  ;;  %v2536_v27 = vadd.s32 %v5034_v62, %v2527_v44  ;;  %v2542_v10 = vadd.s32 %v2534_v48, %v5199_v30  ;;  %v2543_v52 = vadd.s32 %v2535_v1, %v5199_v30 }
 0x4d1   : > { %v2579_v9 = vmul.f32 %v3071_v53, %v2571_v35  ;;  %vm2549_vm8 = vcmp.lt.s32.totalorder %v2541_v37, 16384  ;;  %vm2548_vm11 = vcmp.lt.s32.totalorder %v2540_v45, 16384  ;;  %v2521_v41 = vadd.s32 56, %v5194_v8 }
 0x4d2   : > { %v2544_v51 = vadd.s32 %v2536_v27, %v5199_v30  ;;  %v3073_v6 = vsel %vm2549_vm8, 1.0, %v3502_v25  ;;  %v3072_v13 = vsel %vm2548_vm11, 1.0, %v3502_v25  ;;  %vm2550_vm14 = vcmp.lt.s32.totalorder %v2542_v10, 16384 }
 0x4d3   : > { %v2587_v7 = vmul.f32 %v2579_v9, %v2579_v9  ;;  %v2581_v21 = vmul.f32 %v3073_v6, %v2573_v49  ;;  %v2580_v16 = vmul.f32 %v3072_v13, %v2572_v54  ;;  %v3074_v43 = vsel %vm2550_vm14, 1.0, %v3502_v25  ;;  %v5203_v49 = vld [vmem:[#allocation9_spill] sm:$0xff] }
 0x4d4   : > { %vm2551_vm1 = vcmp.lt.s32.totalorder %v2543_v52, 16384  ;;  %v2582_v47 = vmul.f32 %v3074_v43, %v2574_v3  ;;  %vm2552_vm6 = vcmp.lt.s32.totalorder %v2544_v51, 16384  ;;  %v2537_v18 = vadd.s32 %v5034_v62, %v2528_v20 }
 0x4d5   : > { %2595 = vadd.xlane.f32.xlu0 %v2587_v7  ;;  %v3075_v15 = vsel %vm2551_vm1, 1.0, %v3502_v25  ;;  %v2589_v34 = vmul.f32 %v2581_v21, %v2581_v21  ;;  %v2588_v46 = vmul.f32 %v2580_v16, %v2580_v16  ;;  %v3076_v50 = vsel %vm2552_vm6, 1.0, %v3502_v25 }
 0x4d6   : > { %v2583_v4 = vmul.f32 %v3075_v15, %v2575_v38  ;;  %v2545_v58 = vadd.s32 %v2537_v18, %v5199_v30  ;;  %v2577_v29 = vsub.f32 %v5003_v61, %v5202_v55  ;;  %v2529_v31 = vmul.u32 128, %v2521_v41 }
 0x4d7   : > { %2599 = vadd.xlane.f32.xlu1 %v2589_v34  ;;  %v2590_v19 = vmul.f32 %v2582_v47, %v2582_v47  ;;  %v2584_v8 = vmul.f32 %v3076_v50, %v2576_v26  ;;  %v2578_v2 = vsub.f32 %v5008_v28, %v5203_v49 }
 0x4d8   : > { %v2591_v56 = vmul.f32 %v2583_v4, %v2583_v4  ;;  %vm2553_vm10 = vcmp.lt.s32.totalorder %v2545_v58, 16384  ;;  %v2538_v63 = vadd.s32 %v5034_v62, %v2529_v31 }
 0x4d9   : > { %2597 = vadd.xlane.f32.xlu0 %v2588_v46  ;;  %v3077_v35 = vsel %vm2553_vm10, 1.0, %v3502_v25  ;;  %v2592_v17 = vmul.f32 %v2584_v8, %v2584_v8 }
 0x4da   : > { %v2585_v57 = vmul.f32 %v3077_v35, %v2577_v29  ;;  %v2546_v23 = vadd.s32 %v2538_v63, %v5199_v30 }
 0x4db   : > { %2601 = vadd.xlane.f32.xlu1 %v2590_v19 }
 0x4dc   : > { %v2593_v61 = vmul.f32 %v2585_v57, %v2585_v57  ;;  %vm2554_vm15 = vcmp.lt.s32.totalorder %v2546_v23, 16384 }
 0x4dd   : > { %2603 = vadd.xlane.f32.xlu0 %v2591_v56  ;;  %v3078_v14 = vsel %vm2554_vm15, 1.0, %v3502_v25 }
 0x4de   : > { %v2586_v54 = vmul.f32 %v3078_v14, %v2578_v2 }
 0x4df   : > { %2605 = vadd.xlane.f32.xlu1 %v2592_v17 }
 0x4e0   : > { %v2594_v5 = vmul.f32 %v2586_v54, %v2586_v54 }
 0x4e1   : > { %2607 = vadd.xlane.f32.xlu0 %v2593_v61 }
 0x4e3   : > { %2609 = vadd.xlane.f32.xlu1 %v2594_v5 }
 0x562   : > { %v2596_v24 = vpop.xlane.xlu0 %2595 }
 0x564   : > { %v2600_v62 = vpop.xlane.xlu1 %2599 }
 0x566   : > { %v2598_v39 = vpop.xlane.xlu0 %2597 }
 0x567   : > { %v2611_v12 = vadd.f32 %v2598_v39, %v2596_v24 }
 0x568   : > { %v2602_v59 = vpop.xlane.xlu1 %2601 }
 0x569   : > { %v2612_v3 = vadd.f32 %v2611_v12, %v2600_v62 }
 0x56a   : > { %v2604_v42 = vpop.xlane.xlu0 %2603 }
 0x56b   : > { %v2613_v28 = vadd.f32 %v2612_v3, %v2602_v59 }
 0x56c   : > { %v2606_v32 = vpop.xlane.xlu1 %2605 }
 0x56d   : > { %v2614_v30 = vadd.f32 %v2613_v28, %v2604_v42 }
 0x56e   : > { %v2608_v40 = vpop.xlane.xlu0 %2607 }
 0x56f   : > { %v2615_v0 = vadd.f32 %v2614_v30, %v2606_v32 }
 0x570   : > { %v2610_v38 = vpop.xlane.xlu1 %2609 }
 0x571   : > { %v2616_v36 = vadd.f32 %v2615_v0, %v2608_v40 }
 0x573   : > { %v2617_v33 = vadd.f32 %v2616_v36, %v2610_v38 }
 0x575   : > { %v2618_v22 = vrot.slane %v2617_v33, 4 }
 0x577   : > { %v2619_v44 = vadd.f32 %v2618_v22, %v2617_v33 }
 0x579   : > { %v2620_v60 = vrot.slane %v2619_v44, 2 }
 0x57b   : > { %v2621_v48 = vadd.f32 %v2620_v60, %v2619_v44 }
 0x57d   : > { %v2622_v1 = vrot.slane %v2621_v48, 1 }
 0x57f   : > { %v2623_v11 = vadd.f32 %v2622_v1, %v2621_v48 }
 0x581   : > { %2625 = vst.msk [vmem:[%s3586_s24] sm:$0x1] %vm2624_vm12, %v2623_v11 }
 0x582 PF: > { %s16_s18 = sadd.s32 1, %s3498_s18  }
 0x583   : > { %p13_p7 = scmp.ge.s32.totalorder %s16_s18, 4  }
 0x585   :  { %15 = sbr.rel (!%p13_p7) target bundleno = 1 (0x1), region = 88 }

</bundles_post_ra>
